<compile_context>
chip_gen: v5e
topology: v5e:2x2
jax: 0.10.0
libtpu: 0.0.40
codegen_flags: <defaults>
</compile_context>

<pallas_src>
import jax
import jax.numpy as jnp
from jax.experimental import pallas as pl
from jax.experimental.pallas import tpu as pltpu  # noqa: F401  (no TPU-specific params needed in the no-grid version)

# ---- model hyper-parameters (small, consistent with the module) ----
S = 8            # sequence length (total slices fed to the transformer)
B = 2            # batch
E = 32           # input_dim (embed dim)
H = 4            # num_heads
D = E // H       # head dim
FF = 64          # ff_hidden_dim
FH = FF // 2     # FFN hidden processed as two 32-lane halves (keeps lane width = E)
BS = B * S       # batch folded into rows
EPS = 1e-5       # nn.LayerNorm default eps

# ---- matrix-slab row layout (lane width = E = 32) ----
# rows [ (3h+i)*E , +E )  : per-head projection panel (E, D) for i in {q,k,v}
WROW_WO = 3 * H * E          # 384 : Wo^T            (E,  E)
WROW_W2 = WROW_WO + E        # 416 : W2^T            (FF, E)
WROW_W1A = WROW_W2 + FF      # 480 : W1^T[:, :FH]    (E,  FH)
WROW_W1B = WROW_W1A + E      # 512 : W1^T[:, FH:]    (E,  FH)
WROWS = WROW_W1B + E         # 544

# ---- vector-slab row layout (lane width = 128, zero padded) ----
V_BO, V_G1, V_BN1, V_BF1A, V_BF1B, V_BF2, V_G2, V_BN2 = range(8)
V_MASK = 8                   # rows [8, 8+BS)   lanes [0, BS): additive batch mask
V_BQKV = V_MASK + BS         # rows [24, 24+3H) lanes [0, D) : per-head q/k/v biases
VROWS = ((V_BQKV + 3 * H + 7) // 8) * 8
VLANES = 128


def _transformer_block_kernel(x_ref, w_ref, v_ref, o_ref):
    x = x_ref[...]                                            # (BS, E) f32

    # additive mask: 0 within a batch, -1e30 across batches (block-diag attention)
    mask = v_ref[V_MASK:V_MASK + BS, :BS]                     # (BS, BS)

    # ---- multi-head self-attention (q = k = v = x), heads statically unrolled ----
    # accumulator seeded with the out-projection bias (broadcast hoisted out of the loop)
    acc = jnp.broadcast_to(v_ref[V_BO:V_BO + 1, :E], (BS, E)).astype(jnp.float32)
    for h in range(H):
        r = 3 * h * E
        wq = w_ref[r:r + E, :D]                               # (E, D)  (scale pre-folded)
        wk = w_ref[r + E:r + 2 * E, :D]
        wv = w_ref[r + 2 * E:r + 3 * E, :D]
        brow = V_BQKV + 3 * h
        bq = v_ref[brow:brow + 1, :D]                         # (1, D)  (scale pre-folded)
        bk = v_ref[brow + 1:brow + 2, :D]
        bv = v_ref[brow + 2:brow + 3, :D]

        qh = jnp.dot(x, wq, preferred_element_type=jnp.float32) + bq   # (BS, D)
        kh = jnp.dot(x, wk, preferred_element_type=jnp.float32) + bk
        vh = jnp.dot(x, wv, preferred_element_type=jnp.float32) + bv

        s = jnp.dot(qh, kh.T, preferred_element_type=jnp.float32) + mask
        m = jnp.max(s, axis=-1, keepdims=True)
        p = jnp.exp(s - m)
        l = jnp.sum(p, axis=-1, keepdims=True)

        attn_h = jnp.dot(p, vh, preferred_element_type=jnp.float32)    # (BS, D)
        attn_h = attn_h * pl.reciprocal(l, approx=True)       # normalize after PV (EUP)

        # accumulate the out-projection per head (sublane slice of Wo^T: no concat)
        wo_h = w_ref[WROW_WO + h * D:WROW_WO + (h + 1) * D, :E]         # (D, E)
        acc = acc + jnp.dot(attn_h, wo_h, preferred_element_type=jnp.float32)

    attn = acc                                                # (BS, E), bias already in

    # ---- residual + LayerNorm 1 ----
    x1 = x + attn
    mu1 = jnp.mean(x1, axis=-1, keepdims=True)
    var1 = jnp.mean((x1 - mu1) ** 2, axis=-1, keepdims=True)
    x1 = (x1 - mu1) * jax.lax.rsqrt(var1 + EPS)
    x1 = x1 * v_ref[V_G1:V_G1 + 1, :E] + v_ref[V_BN1:V_BN1 + 1, :E]

    # ---- FFN: Linear -> ReLU -> Linear (hidden dim as two 32-lane halves) ----
    w1a = w_ref[WROW_W1A:WROW_W1A + E, :E]                    # (E, FH)
    w1b = w_ref[WROW_W1B:WROW_W1B + E, :E]
    ha = jnp.maximum(jnp.dot(x1, w1a, preferred_element_type=jnp.float32)
                     + v_ref[V_BF1A:V_BF1A + 1, :FH], 0.0)    # (BS, FH)
    hb = jnp.maximum(jnp.dot(x1, w1b, preferred_element_type=jnp.float32)
                     + v_ref[V_BF1B:V_BF1B + 1, :FH], 0.0)
    w2a = w_ref[WROW_W2:WROW_W2 + FH, :E]                     # (FH, E)
    w2b = w_ref[WROW_W2 + FH:WROW_W2 + FF, :E]
    ffn = (jnp.dot(ha, w2a, preferred_element_type=jnp.float32)
           + jnp.dot(hb, w2b, preferred_element_type=jnp.float32)
           + v_ref[V_BF2:V_BF2 + 1, :E])

    # ---- residual + LayerNorm 2 ----
    x2 = x1 + ffn
    mu2 = jnp.mean(x2, axis=-1, keepdims=True)
    var2 = jnp.mean((x2 - mu2) ** 2, axis=-1, keepdims=True)
    x2 = (x2 - mu2) * jax.lax.rsqrt(var2 + EPS)
    o_ref[...] = x2 * v_ref[V_G2:V_G2 + 1, :E] + v_ref[V_BN2:V_BN2 + 1, :E]


def _pack_params(p):
    """Pack all 12 parameter tensors into 2 slabs (host/XLA side, done once)."""
    scale = 1.0 / (D ** 0.5)
    wqkv = p["wqkv"]                      # (3E, E) packed in_proj_weight [q; k; v]
    bqkv = p["bqkv"]                      # (3E,)
    wo_t = p["wo"].T                      # (E, E)
    w1_t = p["w1"].T                      # (E, FF)
    w2_t = p["w2"].T                      # (FF, E)

    # matrix slab: per-head (E, D) projection panels (lane-padded to E), then
    # Wo^T, W2^T and the two halves of W1^T. The 1/sqrt(D) attention scale is
    # folded into the q panels (and q bias below).
    panels = []
    for h in range(H):
        for i in range(3):                # q, k, v
            w = wqkv[i * E + h * D:i * E + (h + 1) * D, :].T          # (E, D)
            if i == 0:
                w = w * scale
            panels.append(jnp.pad(w, ((0, 0), (0, E - D))))           # (E, E)
    panels += [wo_t, w2_t, w1_t[:, :FH], w1_t[:, FH:]]
    wslab = jnp.concatenate(panels, axis=0)                           # (WROWS, E)
    assert wslab.shape == (WROWS, E)

    # vector / mask slab
    vslab = jnp.zeros((VROWS, VLANES), jnp.float32)
    vslab = vslab.at[V_BO, :E].set(p["bo"])
    vslab = vslab.at[V_G1, :E].set(p["g1"])
    vslab = vslab.at[V_BN1, :E].set(p["bn1"])
    vslab = vslab.at[V_BF1A, :FH].set(p["bf1"][:FH])
    vslab = vslab.at[V_BF1B, :FH].set(p["bf1"][FH:])
    vslab = vslab.at[V_BF2, :E].set(p["bf2"])
    vslab = vslab.at[V_G2, :E].set(p["g2"])
    vslab = vslab.at[V_BN2, :E].set(p["bn2"])

    bidx = jnp.arange(BS) // S
    mask = jnp.where(bidx[:, None] == bidx[None, :], 0.0, -1e30).astype(jnp.float32)
    vslab = vslab.at[V_MASK:V_MASK + BS, :BS].set(mask)

    for h in range(H):
        for i in range(3):
            b = bqkv[i * E + h * D:i * E + (h + 1) * D]
            if i == 0:
                b = b * scale
            vslab = vslab.at[V_BQKV + 3 * h + i, :D].set(b)
    return wslab, vslab


def transformer_block_pallas(x_bse, params):
    """x_bse: (B, S, E) float32. Returns (B, S, E)."""
    wslab, vslab = _pack_params(params)
    x2d = x_bse.reshape(BS, E)            # batch folded into the row (sublane) axis

    out = pl.pallas_call(
        _transformer_block_kernel,
        out_shape=jax.ShapeDtypeStruct((BS, E), jnp.float32),
        # no grid: the whole problem is one kernel step; every operand is a single
        # whole-array VMEM block (3 input DMAs, 1 output DMA).
    )(x2d, wslab, vslab)
    return out.reshape(B, S, E)


def _init_params(key):
    """Deterministic synthetic parameters matching the PyTorch module shapes."""
    ks = jax.random.split(key, 12)
    u = lambda k, shape, s=0.1: jax.random.uniform(k, shape, jnp.float32, -s, s)
    return {
        # nn.MultiheadAttention(E, H): in_proj (3E, E)/(3E,), out_proj (E, E)/(E,)
        "wqkv": u(ks[0], (3 * E, E)),
        "bqkv": u(ks[1], (3 * E,)),
        "wo":   u(ks[2], (E, E)),
        "bo":   u(ks[3], (E,)),
        # norm1 (randomized affine to make the check non-trivial)
        "g1":   1.0 + u(ks[4], (E,)),
        "bn1":  u(ks[5], (E,)),
        # ffn: Linear(E, FF) -> ReLU -> Linear(FF, E)
        "w1":   u(ks[6], (FF, E)),
        "bf1":  u(ks[7], (FF,)),
        "w2":   u(ks[8], (E, FF)),
        "bf2":  u(ks[9], (E,)),
        # norm2
        "g2":   1.0 + u(ks[10], (E,)),
        "bn2":  u(ks[11], (E,)),
    }


def _reference_jax(x_bse, p):
    """Pure-JAX reference reproducing PyTorch semantics, for validation."""
    def one_batch(x):  # x: (S, E)
        qkv = x @ p["wqkv"].T + p["bqkv"]
        q, k, v = qkv[:, :E], qkv[:, E:2 * E], qkv[:, 2 * E:]
        q = q.reshape(S, H, D).transpose(1, 0, 2)
        k = k.reshape(S, H, D).transpose(1, 0, 2)
        v = v.reshape(S, H, D).transpose(1, 0, 2)
        s = jnp.einsum("hqd,hkd->hqk", q, k) / (D ** 0.5)
        a = jax.nn.softmax(s, axis=-1)
        o = jnp.einsum("hqk,hkd->hqd", a, v).transpose(1, 0, 2).reshape(S, E)
        attn = o @ p["wo"].T + p["bo"]

        def ln(z, g, b):
            mu = jnp.mean(z, axis=-1, keepdims=True)
            var = jnp.mean((z - mu) ** 2, axis=-1, keepdims=True)
            return (z - mu) * jax.lax.rsqrt(var + EPS) * g + b

        x1 = ln(x + attn, p["g1"], p["bn1"])
        ffn = jnp.maximum(x1 @ p["w1"].T + p["bf1"], 0.0) @ p["w2"].T + p["bf2"]
        return ln(x1 + ffn, p["g2"], p["bn2"])

    return jax.vmap(one_batch)(x_bse)


if __name__ == "__main__":
    key = jax.random.PRNGKey(0)
    k_x, k_p = jax.random.split(key)

    # PyTorch-convention input is (S, B, E); transpose to (B, S, E) at the boundary.
    x_sbe = jax.random.normal(k_x, (S, B, E), jnp.float32)
    x_bse = jnp.transpose(x_sbe, (1, 0, 2))

    params = _init_params(k_p)

    out = transformer_block_pallas(x_bse, params)
    out = jax.block_until_ready(out)

    ref = _reference_jax(x_bse, params)
    assert out.shape == (B, S, E)
    # tolerance loosened slightly vs. exact reference to cover the EUP approximate
    # reciprocal used in the softmax denominator (pl.reciprocal(approx=True)).
    assert jnp.allclose(out, ref, atol=1e-3, rtol=1e-3), "mismatch vs JAX reference"

    print("KERNEL_OK")
</pallas_src>

<mosaic_0001>
module attributes {stable_mosaic.version = 11 : i64} {
  func.func @_transformer_block_kernel(%arg0: memref<16x32xf32, #tpu.memory_space<vmem>>, %arg1: memref<544x32xf32, #tpu.memory_space<vmem>>, %arg2: memref<40x128xf32, #tpu.memory_space<vmem>>, %arg3: memref<16x32xf32, #tpu.memory_space<vmem>>) attributes {dimension_semantics = [], scalar_prefetch = 0 : i64, scratch_operands = 0 : i64, tpu.core_type = #tpu.core_type<tc>} {
    %c0 = arith.constant 0 : index
    %c0_0 = arith.constant 0 : index
    %0 = vector.load %arg0[%c0, %c0_0] : memref<16x32xf32, #tpu.memory_space<vmem>>, vector<16x32xf32>
    %c8 = arith.constant 8 : index
    %c0_1 = arith.constant 0 : index
    %1 = vector.load %arg2[%c8, %c0_1] : memref<40x128xf32, #tpu.memory_space<vmem>>, vector<16x16xf32>
    %c0_2 = arith.constant 0 : index
    %c0_3 = arith.constant 0 : index
    %2 = vector.load %arg2[%c0_2, %c0_3] : memref<40x128xf32, #tpu.memory_space<vmem>>, vector<1x32xf32>
    %3 = vector.shape_cast %2 : vector<1x32xf32> to vector<1x32xf32>
    %4 = vector.broadcast %3 : vector<1x32xf32> to vector<16x32xf32>
    %c0_4 = arith.constant 0 : index
    %c0_5 = arith.constant 0 : index
    %5 = vector.load %arg1[%c0_4, %c0_5] : memref<544x32xf32, #tpu.memory_space<vmem>>, vector<32x8xf32>
    %c32 = arith.constant 32 : index
    %c0_6 = arith.constant 0 : index
    %6 = vector.load %arg1[%c32, %c0_6] : memref<544x32xf32, #tpu.memory_space<vmem>>, vector<32x8xf32>
    %c64 = arith.constant 64 : index
    %c0_7 = arith.constant 0 : index
    %7 = vector.load %arg1[%c64, %c0_7] : memref<544x32xf32, #tpu.memory_space<vmem>>, vector<32x8xf32>
    %c24 = arith.constant 24 : index
    %c0_8 = arith.constant 0 : index
    %8 = vector.load %arg2[%c24, %c0_8] : memref<40x128xf32, #tpu.memory_space<vmem>>, vector<1x8xf32>
    %c25 = arith.constant 25 : index
    %c0_9 = arith.constant 0 : index
    %9 = vector.load %arg2[%c25, %c0_9] : memref<40x128xf32, #tpu.memory_space<vmem>>, vector<1x8xf32>
    %c26 = arith.constant 26 : index
    %c0_10 = arith.constant 0 : index
    %10 = vector.load %arg2[%c26, %c0_10] : memref<40x128xf32, #tpu.memory_space<vmem>>, vector<1x8xf32>
    %cst = arith.constant dense<0.000000e+00> : vector<16x8xf32>
    %11 = tpu.matmul %0, %5, %cst {dimension_numbers = #tpu.dot_dimension_numbers<[1], [0], [0], [1], [0, 0, 1, 1], [], []>} : vector<16x32xf32>, vector<32x8xf32>, vector<16x8xf32> -> vector<16x8xf32>
    %12 = vector.broadcast %8 : vector<1x8xf32> to vector<16x8xf32>
    %13 = arith.addf %11, %12 : vector<16x8xf32>
    %cst_11 = arith.constant dense<0.000000e+00> : vector<16x8xf32>
    %14 = tpu.matmul %0, %6, %cst_11 {dimension_numbers = #tpu.dot_dimension_numbers<[1], [0], [0], [1], [0, 0, 1, 1], [], []>} : vector<16x32xf32>, vector<32x8xf32>, vector<16x8xf32> -> vector<16x8xf32>
    %15 = vector.broadcast %9 : vector<1x8xf32> to vector<16x8xf32>
    %16 = arith.addf %14, %15 : vector<16x8xf32>
    %cst_12 = arith.constant dense<0.000000e+00> : vector<16x8xf32>
    %17 = tpu.matmul %0, %7, %cst_12 {dimension_numbers = #tpu.dot_dimension_numbers<[1], [0], [0], [1], [0, 0, 1, 1], [], []>} : vector<16x32xf32>, vector<32x8xf32>, vector<16x8xf32> -> vector<16x8xf32>
    %18 = vector.broadcast %10 : vector<1x8xf32> to vector<16x8xf32>
    %19 = arith.addf %17, %18 : vector<16x8xf32>
    %20 = tpu.transpose %16, [1, 0] : vector<16x8xf32> -> vector<8x16xf32>
    %cst_13 = arith.constant dense<0.000000e+00> : vector<16x16xf32>
    %21 = tpu.matmul %13, %20, %cst_13 {dimension_numbers = #tpu.dot_dimension_numbers<[1], [0], [0], [1], [0, 0, 1, 1], [], []>} : vector<16x8xf32>, vector<8x16xf32>, vector<16x16xf32> -> vector<16x16xf32>
    %22 = arith.addf %21, %1 : vector<16x16xf32>
    %cst_14 = arith.constant dense<0xFF800000> : vector<16xf32>
    %23 = vector.multi_reduction <maximumf>, %22, %cst_14 [1] : vector<16x16xf32> to vector<16xf32>
    %24 = vector.shape_cast %23 : vector<16xf32> to vector<16x1xf32>
    %25 = vector.broadcast %24 : vector<16x1xf32> to vector<16x16xf32>
    %26 = arith.subf %22, %25 : vector<16x16xf32>
    %27 = math.exp %26 : vector<16x16xf32>
    %cst_15 = arith.constant dense<0.000000e+00> : vector<16xf32>
    %28 = vector.multi_reduction <add>, %27, %cst_15 [1] : vector<16x16xf32> to vector<16xf32>
    %29 = vector.shape_cast %28 : vector<16xf32> to vector<16x1xf32>
    %cst_16 = arith.constant dense<0.000000e+00> : vector<16x8xf32>
    %30 = tpu.matmul %27, %19, %cst_16 {dimension_numbers = #tpu.dot_dimension_numbers<[1], [0], [0], [1], [0, 0, 1, 1], [], []>} : vector<16x16xf32>, vector<16x8xf32>, vector<16x8xf32> -> vector<16x8xf32>
    %31 = tpu.reciprocal %29 {approx = true} : vector<16x1xf32> -> vector<16x1xf32>
    %32 = vector.broadcast %31 : vector<16x1xf32> to vector<16x8xf32>
    %33 = arith.mulf %30, %32 : vector<16x8xf32>
    %c384 = arith.constant 384 : index
    %c0_17 = arith.constant 0 : index
    %34 = vector.load %arg1[%c384, %c0_17] : memref<544x32xf32, #tpu.memory_space<vmem>>, vector<8x32xf32>
    %cst_18 = arith.constant dense<0.000000e+00> : vector<16x32xf32>
    %35 = tpu.matmul %33, %34, %cst_18 {dimension_numbers = #tpu.dot_dimension_numbers<[1], [0], [0], [1], [0, 0, 1, 1], [], []>} : vector<16x8xf32>, vector<8x32xf32>, vector<16x32xf32> -> vector<16x32xf32>
    %36 = arith.addf %4, %35 : vector<16x32xf32>
    %c96 = arith.constant 96 : index
    %c0_19 = arith.constant 0 : index
    %37 = vector.load %arg1[%c96, %c0_19] : memref<544x32xf32, #tpu.memory_space<vmem>>, vector<32x8xf32>
    %c128 = arith.constant 128 : index
    %c0_20 = arith.constant 0 : index
    %38 = vector.load %arg1[%c128, %c0_20] : memref<544x32xf32, #tpu.memory_space<vmem>>, vector<32x8xf32>
    %c160 = arith.constant 160 : index
    %c0_21 = arith.constant 0 : index
    %39 = vector.load %arg1[%c160, %c0_21] : memref<544x32xf32, #tpu.memory_space<vmem>>, vector<32x8xf32>
    %c27 = arith.constant 27 : index
    %c0_22 = arith.constant 0 : index
    %40 = vector.load %arg2[%c27, %c0_22] : memref<40x128xf32, #tpu.memory_space<vmem>>, vector<1x8xf32>
    %c28 = arith.constant 28 : index
    %c0_23 = arith.constant 0 : index
    %41 = vector.load %arg2[%c28, %c0_23] : memref<40x128xf32, #tpu.memory_space<vmem>>, vector<1x8xf32>
    %c29 = arith.constant 29 : index
    %c0_24 = arith.constant 0 : index
    %42 = vector.load %arg2[%c29, %c0_24] : memref<40x128xf32, #tpu.memory_space<vmem>>, vector<1x8xf32>
    %cst_25 = arith.constant dense<0.000000e+00> : vector<16x8xf32>
    %43 = tpu.matmul %0, %37, %cst_25 {dimension_numbers = #tpu.dot_dimension_numbers<[1], [0], [0], [1], [0, 0, 1, 1], [], []>} : vector<16x32xf32>, vector<32x8xf32>, vector<16x8xf32> -> vector<16x8xf32>
    %44 = vector.broadcast %40 : vector<1x8xf32> to vector<16x8xf32>
    %45 = arith.addf %43, %44 : vector<16x8xf32>
    %cst_26 = arith.constant dense<0.000000e+00> : vector<16x8xf32>
    %46 = tpu.matmul %0, %38, %cst_26 {dimension_numbers = #tpu.dot_dimension_numbers<[1], [0], [0], [1], [0, 0, 1, 1], [], []>} : vector<16x32xf32>, vector<32x8xf32>, vector<16x8xf32> -> vector<16x8xf32>
    %47 = vector.broadcast %41 : vector<1x8xf32> to vector<16x8xf32>
    %48 = arith.addf %46, %47 : vector<16x8xf32>
    %cst_27 = arith.constant dense<0.000000e+00> : vector<16x8xf32>
    %49 = tpu.matmul %0, %39, %cst_27 {dimension_numbers = #tpu.dot_dimension_numbers<[1], [0], [0], [1], [0, 0, 1, 1], [], []>} : vector<16x32xf32>, vector<32x8xf32>, vector<16x8xf32> -> vector<16x8xf32>
    %50 = vector.broadcast %42 : vector<1x8xf32> to vector<16x8xf32>
    %51 = arith.addf %49, %50 : vector<16x8xf32>
    %52 = tpu.transpose %48, [1, 0] : vector<16x8xf32> -> vector<8x16xf32>
    %cst_28 = arith.constant dense<0.000000e+00> : vector<16x16xf32>
    %53 = tpu.matmul %45, %52, %cst_28 {dimension_numbers = #tpu.dot_dimension_numbers<[1], [0], [0], [1], [0, 0, 1, 1], [], []>} : vector<16x8xf32>, vector<8x16xf32>, vector<16x16xf32> -> vector<16x16xf32>
    %54 = arith.addf %53, %1 : vector<16x16xf32>
    %cst_29 = arith.constant dense<0xFF800000> : vector<16xf32>
    %55 = vector.multi_reduction <maximumf>, %54, %cst_29 [1] : vector<16x16xf32> to vector<16xf32>
    %56 = vector.shape_cast %55 : vector<16xf32> to vector<16x1xf32>
    %57 = vector.broadcast %56 : vector<16x1xf32> to vector<16x16xf32>
    %58 = arith.subf %54, %57 : vector<16x16xf32>
    %59 = math.exp %58 : vector<16x16xf32>
    %cst_30 = arith.constant dense<0.000000e+00> : vector<16xf32>
    %60 = vector.multi_reduction <add>, %59, %cst_30 [1] : vector<16x16xf32> to vector<16xf32>
    %61 = vector.shape_cast %60 : vector<16xf32> to vector<16x1xf32>
    %cst_31 = arith.constant dense<0.000000e+00> : vector<16x8xf32>
    %62 = tpu.matmul %59, %51, %cst_31 {dimension_numbers = #tpu.dot_dimension_numbers<[1], [0], [0], [1], [0, 0, 1, 1], [], []>} : vector<16x16xf32>, vector<16x8xf32>, vector<16x8xf32> -> vector<16x8xf32>
    %63 = tpu.reciprocal %61 {approx = true} : vector<16x1xf32> -> vector<16x1xf32>
    %64 = vector.broadcast %63 : vector<16x1xf32> to vector<16x8xf32>
    %65 = arith.mulf %62, %64 : vector<16x8xf32>
    %c392 = arith.constant 392 : index
    %c0_32 = arith.constant 0 : index
    %66 = vector.load %arg1[%c392, %c0_32] : memref<544x32xf32, #tpu.memory_space<vmem>>, vector<8x32xf32>
    %cst_33 = arith.constant dense<0.000000e+00> : vector<16x32xf32>
    %67 = tpu.matmul %65, %66, %cst_33 {dimension_numbers = #tpu.dot_dimension_numbers<[1], [0], [0], [1], [0, 0, 1, 1], [], []>} : vector<16x8xf32>, vector<8x32xf32>, vector<16x32xf32> -> vector<16x32xf32>
    %68 = arith.addf %36, %67 : vector<16x32xf32>
    %c192 = arith.constant 192 : index
    %c0_34 = arith.constant 0 : index
    %69 = vector.load %arg1[%c192, %c0_34] : memref<544x32xf32, #tpu.memory_space<vmem>>, vector<32x8xf32>
    %c224 = arith.constant 224 : index
    %c0_35 = arith.constant 0 : index
    %70 = vector.load %arg1[%c224, %c0_35] : memref<544x32xf32, #tpu.memory_space<vmem>>, vector<32x8xf32>
    %c256 = arith.constant 256 : index
    %c0_36 = arith.constant 0 : index
    %71 = vector.load %arg1[%c256, %c0_36] : memref<544x32xf32, #tpu.memory_space<vmem>>, vector<32x8xf32>
    %c30 = arith.constant 30 : index
    %c0_37 = arith.constant 0 : index
    %72 = vector.load %arg2[%c30, %c0_37] : memref<40x128xf32, #tpu.memory_space<vmem>>, vector<1x8xf32>
    %c31 = arith.constant 31 : index
    %c0_38 = arith.constant 0 : index
    %73 = vector.load %arg2[%c31, %c0_38] : memref<40x128xf32, #tpu.memory_space<vmem>>, vector<1x8xf32>
    %c32_39 = arith.constant 32 : index
    %c0_40 = arith.constant 0 : index
    %74 = vector.load %arg2[%c32_39, %c0_40] : memref<40x128xf32, #tpu.memory_space<vmem>>, vector<1x8xf32>
    %cst_41 = arith.constant dense<0.000000e+00> : vector<16x8xf32>
    %75 = tpu.matmul %0, %69, %cst_41 {dimension_numbers = #tpu.dot_dimension_numbers<[1], [0], [0], [1], [0, 0, 1, 1], [], []>} : vector<16x32xf32>, vector<32x8xf32>, vector<16x8xf32> -> vector<16x8xf32>
    %76 = vector.broadcast %72 : vector<1x8xf32> to vector<16x8xf32>
    %77 = arith.addf %75, %76 : vector<16x8xf32>
    %cst_42 = arith.constant dense<0.000000e+00> : vector<16x8xf32>
    %78 = tpu.matmul %0, %70, %cst_42 {dimension_numbers = #tpu.dot_dimension_numbers<[1], [0], [0], [1], [0, 0, 1, 1], [], []>} : vector<16x32xf32>, vector<32x8xf32>, vector<16x8xf32> -> vector<16x8xf32>
    %79 = vector.broadcast %73 : vector<1x8xf32> to vector<16x8xf32>
    %80 = arith.addf %78, %79 : vector<16x8xf32>
    %cst_43 = arith.constant dense<0.000000e+00> : vector<16x8xf32>
    %81 = tpu.matmul %0, %71, %cst_43 {dimension_numbers = #tpu.dot_dimension_numbers<[1], [0], [0], [1], [0, 0, 1, 1], [], []>} : vector<16x32xf32>, vector<32x8xf32>, vector<16x8xf32> -> vector<16x8xf32>
    %82 = vector.broadcast %74 : vector<1x8xf32> to vector<16x8xf32>
    %83 = arith.addf %81, %82 : vector<16x8xf32>
    %84 = tpu.transpose %80, [1, 0] : vector<16x8xf32> -> vector<8x16xf32>
    %cst_44 = arith.constant dense<0.000000e+00> : vector<16x16xf32>
    %85 = tpu.matmul %77, %84, %cst_44 {dimension_numbers = #tpu.dot_dimension_numbers<[1], [0], [0], [1], [0, 0, 1, 1], [], []>} : vector<16x8xf32>, vector<8x16xf32>, vector<16x16xf32> -> vector<16x16xf32>
    %86 = arith.addf %85, %1 : vector<16x16xf32>
    %cst_45 = arith.constant dense<0xFF800000> : vector<16xf32>
    %87 = vector.multi_reduction <maximumf>, %86, %cst_45 [1] : vector<16x16xf32> to vector<16xf32>
    %88 = vector.shape_cast %87 : vector<16xf32> to vector<16x1xf32>
    %89 = vector.broadcast %88 : vector<16x1xf32> to vector<16x16xf32>
    %90 = arith.subf %86, %89 : vector<16x16xf32>
    %91 = math.exp %90 : vector<16x16xf32>
    %cst_46 = arith.constant dense<0.000000e+00> : vector<16xf32>
    %92 = vector.multi_reduction <add>, %91, %cst_46 [1] : vector<16x16xf32> to vector<16xf32>
    %93 = vector.shape_cast %92 : vector<16xf32> to vector<16x1xf32>
    %cst_47 = arith.constant dense<0.000000e+00> : vector<16x8xf32>
    %94 = tpu.matmul %91, %83, %cst_47 {dimension_numbers = #tpu.dot_dimension_numbers<[1], [0], [0], [1], [0, 0, 1, 1], [], []>} : vector<16x16xf32>, vector<16x8xf32>, vector<16x8xf32> -> vector<16x8xf32>
    %95 = tpu.reciprocal %93 {approx = true} : vector<16x1xf32> -> vector<16x1xf32>
    %96 = vector.broadcast %95 : vector<16x1xf32> to vector<16x8xf32>
    %97 = arith.mulf %94, %96 : vector<16x8xf32>
    %c400 = arith.constant 400 : index
    %c0_48 = arith.constant 0 : index
    %98 = vector.load %arg1[%c400, %c0_48] : memref<544x32xf32, #tpu.memory_space<vmem>>, vector<8x32xf32>
    %cst_49 = arith.constant dense<0.000000e+00> : vector<16x32xf32>
    %99 = tpu.matmul %97, %98, %cst_49 {dimension_numbers = #tpu.dot_dimension_numbers<[1], [0], [0], [1], [0, 0, 1, 1], [], []>} : vector<16x8xf32>, vector<8x32xf32>, vector<16x32xf32> -> vector<16x32xf32>
    %100 = arith.addf %68, %99 : vector<16x32xf32>
    %c288 = arith.constant 288 : index
    %c0_50 = arith.constant 0 : index
    %101 = vector.load %arg1[%c288, %c0_50] : memref<544x32xf32, #tpu.memory_space<vmem>>, vector<32x8xf32>
    %c320 = arith.constant 320 : index
    %c0_51 = arith.constant 0 : index
    %102 = vector.load %arg1[%c320, %c0_51] : memref<544x32xf32, #tpu.memory_space<vmem>>, vector<32x8xf32>
    %c352 = arith.constant 352 : index
    %c0_52 = arith.constant 0 : index
    %103 = vector.load %arg1[%c352, %c0_52] : memref<544x32xf32, #tpu.memory_space<vmem>>, vector<32x8xf32>
    %c33 = arith.constant 33 : index
    %c0_53 = arith.constant 0 : index
    %104 = vector.load %arg2[%c33, %c0_53] : memref<40x128xf32, #tpu.memory_space<vmem>>, vector<1x8xf32>
    %c34 = arith.constant 34 : index
    %c0_54 = arith.constant 0 : index
    %105 = vector.load %arg2[%c34, %c0_54] : memref<40x128xf32, #tpu.memory_space<vmem>>, vector<1x8xf32>
    %c35 = arith.constant 35 : index
    %c0_55 = arith.constant 0 : index
    %106 = vector.load %arg2[%c35, %c0_55] : memref<40x128xf32, #tpu.memory_space<vmem>>, vector<1x8xf32>
    %cst_56 = arith.constant dense<0.000000e+00> : vector<16x8xf32>
    %107 = tpu.matmul %0, %101, %cst_56 {dimension_numbers = #tpu.dot_dimension_numbers<[1], [0], [0], [1], [0, 0, 1, 1], [], []>} : vector<16x32xf32>, vector<32x8xf32>, vector<16x8xf32> -> vector<16x8xf32>
    %108 = vector.broadcast %104 : vector<1x8xf32> to vector<16x8xf32>
    %109 = arith.addf %107, %108 : vector<16x8xf32>
    %cst_57 = arith.constant dense<0.000000e+00> : vector<16x8xf32>
    %110 = tpu.matmul %0, %102, %cst_57 {dimension_numbers = #tpu.dot_dimension_numbers<[1], [0], [0], [1], [0, 0, 1, 1], [], []>} : vector<16x32xf32>, vector<32x8xf32>, vector<16x8xf32> -> vector<16x8xf32>
    %111 = vector.broadcast %105 : vector<1x8xf32> to vector<16x8xf32>
    %112 = arith.addf %110, %111 : vector<16x8xf32>
    %cst_58 = arith.constant dense<0.000000e+00> : vector<16x8xf32>
    %113 = tpu.matmul %0, %103, %cst_58 {dimension_numbers = #tpu.dot_dimension_numbers<[1], [0], [0], [1], [0, 0, 1, 1], [], []>} : vector<16x32xf32>, vector<32x8xf32>, vector<16x8xf32> -> vector<16x8xf32>
    %114 = vector.broadcast %106 : vector<1x8xf32> to vector<16x8xf32>
    %115 = arith.addf %113, %114 : vector<16x8xf32>
    %116 = tpu.transpose %112, [1, 0] : vector<16x8xf32> -> vector<8x16xf32>
    %cst_59 = arith.constant dense<0.000000e+00> : vector<16x16xf32>
    %117 = tpu.matmul %109, %116, %cst_59 {dimension_numbers = #tpu.dot_dimension_numbers<[1], [0], [0], [1], [0, 0, 1, 1], [], []>} : vector<16x8xf32>, vector<8x16xf32>, vector<16x16xf32> -> vector<16x16xf32>
    %118 = arith.addf %117, %1 : vector<16x16xf32>
    %cst_60 = arith.constant dense<0xFF800000> : vector<16xf32>
    %119 = vector.multi_reduction <maximumf>, %118, %cst_60 [1] : vector<16x16xf32> to vector<16xf32>
    %120 = vector.shape_cast %119 : vector<16xf32> to vector<16x1xf32>
    %121 = vector.broadcast %120 : vector<16x1xf32> to vector<16x16xf32>
    %122 = arith.subf %118, %121 : vector<16x16xf32>
    %123 = math.exp %122 : vector<16x16xf32>
    %cst_61 = arith.constant dense<0.000000e+00> : vector<16xf32>
    %124 = vector.multi_reduction <add>, %123, %cst_61 [1] : vector<16x16xf32> to vector<16xf32>
    %125 = vector.shape_cast %124 : vector<16xf32> to vector<16x1xf32>
    %cst_62 = arith.constant dense<0.000000e+00> : vector<16x8xf32>
    %126 = tpu.matmul %123, %115, %cst_62 {dimension_numbers = #tpu.dot_dimension_numbers<[1], [0], [0], [1], [0, 0, 1, 1], [], []>} : vector<16x16xf32>, vector<16x8xf32>, vector<16x8xf32> -> vector<16x8xf32>
    %127 = tpu.reciprocal %125 {approx = true} : vector<16x1xf32> -> vector<16x1xf32>
    %128 = vector.broadcast %127 : vector<16x1xf32> to vector<16x8xf32>
    %129 = arith.mulf %126, %128 : vector<16x8xf32>
    %c408 = arith.constant 408 : index
    %c0_63 = arith.constant 0 : index
    %130 = vector.load %arg1[%c408, %c0_63] : memref<544x32xf32, #tpu.memory_space<vmem>>, vector<8x32xf32>
    %cst_64 = arith.constant dense<0.000000e+00> : vector<16x32xf32>
    %131 = tpu.matmul %129, %130, %cst_64 {dimension_numbers = #tpu.dot_dimension_numbers<[1], [0], [0], [1], [0, 0, 1, 1], [], []>} : vector<16x8xf32>, vector<8x32xf32>, vector<16x32xf32> -> vector<16x32xf32>
    %132 = arith.addf %100, %131 : vector<16x32xf32>
    %133 = arith.addf %0, %132 : vector<16x32xf32>
    %cst_65 = arith.constant dense<0.000000e+00> : vector<16xf32>
    %134 = vector.multi_reduction <add>, %133, %cst_65 [1] : vector<16x32xf32> to vector<16xf32>
    %135 = vector.shape_cast %134 : vector<16xf32> to vector<16x1xf32>
    %cst_66 = arith.constant 3.200000e+01 : f32
    %136 = vector.broadcast %cst_66 : f32 to vector<16x1xf32>
    %137 = arith.divf %135, %136 : vector<16x1xf32>
    %138 = vector.broadcast %137 : vector<16x1xf32> to vector<16x32xf32>
    %139 = arith.subf %133, %138 : vector<16x32xf32>
    %140 = arith.mulf %139, %139 : vector<16x32xf32>
    %cst_67 = arith.constant dense<0.000000e+00> : vector<16xf32>
    %141 = vector.multi_reduction <add>, %140, %cst_67 [1] : vector<16x32xf32> to vector<16xf32>
    %142 = vector.shape_cast %141 : vector<16xf32> to vector<16x1xf32>
    %cst_68 = arith.constant 3.200000e+01 : f32
    %143 = vector.broadcast %cst_68 : f32 to vector<16x1xf32>
    %144 = arith.divf %142, %143 : vector<16x1xf32>
    %145 = vector.broadcast %137 : vector<16x1xf32> to vector<16x32xf32>
    %146 = arith.subf %133, %145 : vector<16x32xf32>
    %cst_69 = arith.constant 9.99999974E-6 : f32
    %147 = vector.broadcast %cst_69 : f32 to vector<16x1xf32>
    %148 = arith.addf %144, %147 : vector<16x1xf32>
    %149 = math.rsqrt %148 : vector<16x1xf32>
    %150 = vector.broadcast %149 : vector<16x1xf32> to vector<16x32xf32>
    %151 = arith.mulf %146, %150 : vector<16x32xf32>
    %c1 = arith.constant 1 : index
    %c0_70 = arith.constant 0 : index
    %152 = vector.load %arg2[%c1, %c0_70] : memref<40x128xf32, #tpu.memory_space<vmem>>, vector<1x32xf32>
    %153 = vector.broadcast %152 : vector<1x32xf32> to vector<16x32xf32>
    %154 = arith.mulf %151, %153 : vector<16x32xf32>
    %c2 = arith.constant 2 : index
    %c0_71 = arith.constant 0 : index
    %155 = vector.load %arg2[%c2, %c0_71] : memref<40x128xf32, #tpu.memory_space<vmem>>, vector<1x32xf32>
    %156 = vector.broadcast %155 : vector<1x32xf32> to vector<16x32xf32>
    %157 = arith.addf %154, %156 : vector<16x32xf32>
    %c480 = arith.constant 480 : index
    %c0_72 = arith.constant 0 : index
    %158 = vector.load %arg1[%c480, %c0_72] : memref<544x32xf32, #tpu.memory_space<vmem>>, vector<32x32xf32>
    %c512 = arith.constant 512 : index
    %c0_73 = arith.constant 0 : index
    %159 = vector.load %arg1[%c512, %c0_73] : memref<544x32xf32, #tpu.memory_space<vmem>>, vector<32x32xf32>
    %cst_74 = arith.constant dense<0.000000e+00> : vector<16x32xf32>
    %160 = tpu.matmul %157, %158, %cst_74 {dimension_numbers = #tpu.dot_dimension_numbers<[1], [0], [0], [1], [0, 0, 1, 1], [], []>} : vector<16x32xf32>, vector<32x32xf32>, vector<16x32xf32> -> vector<16x32xf32>
    %c3 = arith.constant 3 : index
    %c0_75 = arith.constant 0 : index
    %161 = vector.load %arg2[%c3, %c0_75] : memref<40x128xf32, #tpu.memory_space<vmem>>, vector<1x32xf32>
    %162 = vector.broadcast %161 : vector<1x32xf32> to vector<16x32xf32>
    %163 = arith.addf %160, %162 : vector<16x32xf32>
    %cst_76 = arith.constant 0.000000e+00 : f32
    %164 = vector.broadcast %cst_76 : f32 to vector<16x32xf32>
    %165 = arith.maximumf %163, %164 : vector<16x32xf32>
    %cst_77 = arith.constant dense<0.000000e+00> : vector<16x32xf32>
    %166 = tpu.matmul %157, %159, %cst_77 {dimension_numbers = #tpu.dot_dimension_numbers<[1], [0], [0], [1], [0, 0, 1, 1], [], []>} : vector<16x32xf32>, vector<32x32xf32>, vector<16x32xf32> -> vector<16x32xf32>
    %c4 = arith.constant 4 : index
    %c0_78 = arith.constant 0 : index
    %167 = vector.load %arg2[%c4, %c0_78] : memref<40x128xf32, #tpu.memory_space<vmem>>, vector<1x32xf32>
    %168 = vector.broadcast %167 : vector<1x32xf32> to vector<16x32xf32>
    %169 = arith.addf %166, %168 : vector<16x32xf32>
    %cst_79 = arith.constant 0.000000e+00 : f32
    %170 = vector.broadcast %cst_79 : f32 to vector<16x32xf32>
    %171 = arith.maximumf %169, %170 : vector<16x32xf32>
    %c416 = arith.constant 416 : index
    %c0_80 = arith.constant 0 : index
    %172 = vector.load %arg1[%c416, %c0_80] : memref<544x32xf32, #tpu.memory_space<vmem>>, vector<32x32xf32>
    %c448 = arith.constant 448 : index
    %c0_81 = arith.constant 0 : index
    %173 = vector.load %arg1[%c448, %c0_81] : memref<544x32xf32, #tpu.memory_space<vmem>>, vector<32x32xf32>
    %cst_82 = arith.constant dense<0.000000e+00> : vector<16x32xf32>
    %174 = tpu.matmul %165, %172, %cst_82 {dimension_numbers = #tpu.dot_dimension_numbers<[1], [0], [0], [1], [0, 0, 1, 1], [], []>} : vector<16x32xf32>, vector<32x32xf32>, vector<16x32xf32> -> vector<16x32xf32>
    %cst_83 = arith.constant dense<0.000000e+00> : vector<16x32xf32>
    %175 = tpu.matmul %171, %173, %cst_83 {dimension_numbers = #tpu.dot_dimension_numbers<[1], [0], [0], [1], [0, 0, 1, 1], [], []>} : vector<16x32xf32>, vector<32x32xf32>, vector<16x32xf32> -> vector<16x32xf32>
    %176 = arith.addf %174, %175 : vector<16x32xf32>
    %c5 = arith.constant 5 : index
    %c0_84 = arith.constant 0 : index
    %177 = vector.load %arg2[%c5, %c0_84] : memref<40x128xf32, #tpu.memory_space<vmem>>, vector<1x32xf32>
    %178 = vector.broadcast %177 : vector<1x32xf32> to vector<16x32xf32>
    %179 = arith.addf %176, %178 : vector<16x32xf32>
    %180 = arith.addf %157, %179 : vector<16x32xf32>
    %cst_85 = arith.constant dense<0.000000e+00> : vector<16xf32>
    %181 = vector.multi_reduction <add>, %180, %cst_85 [1] : vector<16x32xf32> to vector<16xf32>
    %182 = vector.shape_cast %181 : vector<16xf32> to vector<16x1xf32>
    %cst_86 = arith.constant 3.200000e+01 : f32
    %183 = vector.broadcast %cst_86 : f32 to vector<16x1xf32>
    %184 = arith.divf %182, %183 : vector<16x1xf32>
    %185 = vector.broadcast %184 : vector<16x1xf32> to vector<16x32xf32>
    %186 = arith.subf %180, %185 : vector<16x32xf32>
    %187 = arith.mulf %186, %186 : vector<16x32xf32>
    %cst_87 = arith.constant dense<0.000000e+00> : vector<16xf32>
    %188 = vector.multi_reduction <add>, %187, %cst_87 [1] : vector<16x32xf32> to vector<16xf32>
    %189 = vector.shape_cast %188 : vector<16xf32> to vector<16x1xf32>
    %cst_88 = arith.constant 3.200000e+01 : f32
    %190 = vector.broadcast %cst_88 : f32 to vector<16x1xf32>
    %191 = arith.divf %189, %190 : vector<16x1xf32>
    %192 = vector.broadcast %184 : vector<16x1xf32> to vector<16x32xf32>
    %193 = arith.subf %180, %192 : vector<16x32xf32>
    %cst_89 = arith.constant 9.99999974E-6 : f32
    %194 = vector.broadcast %cst_89 : f32 to vector<16x1xf32>
    %195 = arith.addf %191, %194 : vector<16x1xf32>
    %196 = math.rsqrt %195 : vector<16x1xf32>
    %197 = vector.broadcast %196 : vector<16x1xf32> to vector<16x32xf32>
    %198 = arith.mulf %193, %197 : vector<16x32xf32>
    %c6 = arith.constant 6 : index
    %c0_90 = arith.constant 0 : index
    %199 = vector.load %arg2[%c6, %c0_90] : memref<40x128xf32, #tpu.memory_space<vmem>>, vector<1x32xf32>
    %200 = vector.broadcast %199 : vector<1x32xf32> to vector<16x32xf32>
    %201 = arith.mulf %198, %200 : vector<16x32xf32>
    %c7 = arith.constant 7 : index
    %c0_91 = arith.constant 0 : index
    %202 = vector.load %arg2[%c7, %c0_91] : memref<40x128xf32, #tpu.memory_space<vmem>>, vector<1x32xf32>
    %203 = vector.broadcast %202 : vector<1x32xf32> to vector<16x32xf32>
    %204 = arith.addf %201, %203 : vector<16x32xf32>
    %c0_92 = arith.constant 0 : index
    %c0_93 = arith.constant 0 : index
    %205 = vector.load %arg3[%c0_92, %c0_93] : memref<16x32xf32, #tpu.memory_space<vmem>>, vector<16x32xf32>
    tpu.vector_store %arg3[%c0_92, %c0_93], %204 {strides = array<i32>} : memref<16x32xf32, #tpu.memory_space<vmem>>, vector<16x32xf32>,
    return
  }
}

</mosaic_0001>

<bundles_post_ra>
// kernel: tpu_custom_call.1
= control target key start
LH: loop header
LB: loop body
LE: loop exit
PB: predicated region body
PF: predicated region fallthrough
CT: control target
= control target key end

     0   :  { %vm37_vm0 = vcmask 261120   ;;  %s1741_s0 = inlined_call_operand.vmem [shape: f32[16,32], index: 0, kind: input, shape index: {}]   ;;  %s1742_s1 = inlined_call_operand.vmem [shape: f32[544,32], index: 1, kind: input, shape index: {}]   ;;  %s1743_s2 = inlined_call_operand.vmem [shape: f32[40,128], index: 2, kind: input, shape index: {}]   ;;  %s1744_s3 = inlined_call_operand.hbm [shape: f32[16,32], index: 3, kind: output, shape index: {}]  }
   0x1   :  { %v28_v0 = vld [vmem:[%s1742_s1 + $0x38] sm:$0xff]  ;;  %v27_v1 = vld [vmem:[%s1742_s1 + $0x30] sm:$0xff]  ;;  %v26_v3 = vld [vmem:[%s1742_s1 + $0x28] sm:$0xff] }
   0x2   :  { %80 = vmatpush.msra.mxu1 %v28_v0  ;;  %v24_v2 = vld [vmem:[%s1742_s1 + $0x18] sm:$0xff]  ;;  %v25_v4 = vld [vmem:[%s1742_s1 + $0x20] sm:$0xff]  ;;  %v23_v5 = vld [vmem:[%s1742_s1 + $0x10] sm:$0xff] }
   0x3   :  { %56 = vmatpush.msra.mxu0 %v24_v2  ;;  %v1324_v6 = vld [vmem:[%s1741_s0] sm:$0xff]  ;;  %v22_v7 = vld [vmem:[%s1742_s1 + $0x8] sm:$0xff] }
   0x4   :  { %81 = vmatpush.msra.mxu1 %v27_v1  ;;  %v21_v8 = vld [vmem:[%s1742_s1] sm:$0xff] }
   0x5   :  { %57 = vmatpush.msra.mxu0 %v23_v5 }
   0x6   :  { %82 = vmatpush.msra.mxu1 %v26_v3 }
   0x7   :  { %58 = vmatpush.msra.mxu0 %v22_v7 }
   0x8   :  { %83 = vmatpush.msra.mxu1 %v25_v4 }
   0x9   :  { %1125 = vmatmul.msk.f32.vlgmr.msra.gmra.mxu1 %vm37_vm0, %v1324_v6  ;;  %59 = vmatpush.msra.mxu0 %v21_v8 }
   0xa   :  { %1123 = vmatmul.msk.f32.vlgmr.msra.gmra.mxu0 %vm37_vm0, %v1324_v6 }
   0xb   :  { %8 = vsyncpa [#allocation3], 0  ;;  %v1339_v9 = vld [vmem:[%s1741_s0 + $0x8] sm:$0xff]  ;;  %v32_v10 = vld [vmem:[%s1742_s1 + $0x58] sm:$0xff]  ;;  %vm115_vm1 = vcmask 64512   ;;  %vm151_vm2 = vcmask 130048  }
   0xc   :  { %v31_v11 = vld [vmem:[%s1742_s1 + $0x50] sm:$0xff]  ;;  %104 = vmatpush.msra.mxu2 %v32_v10  ;;  %v30_v12 = vld [vmem:[%s1742_s1 + $0x48] sm:$0xff]  ;;  %v29_v13 = vld [vmem:[%s1742_s1 + $0x40] sm:$0xff]  ;;  %s1280_s27 = smov [#allocation2]   ;;  %s1111_s4 = sshll.u32 %s1744_s3, 4  ;;  %s1112_s4 = int_to_ptr.hbm [resolvable:$true] %s1111_s4 }
   0xd   :  { %v1191_v15 = vld [vmem:[%s1743_s2 + $0x19] ss:$0 sm:$0xff]  ;;  %v1192_v19 = vld [vmem:[%s1743_s2 + $0x18] ss:$0 sm:$0xff]  ;;  %v241_v25 = vld [vmem:[%s1742_s1 + $0x90] sm:$0xff]  ;;  %s1109_s28 = sshll.u32 %s1280_s27, 4  ;;  %s1110_s28 = int_to_ptr.vmem [resolvable:$true] %s1109_s28 }
   0xe   :  { %105 = vmatpush.msra.mxu2 %v31_v11  ;;  %v242_v24 = vld [vmem:[%s1742_s1 + $0x98] sm:$0xff]  ;;  %v240_v26 = vld [vmem:[%s1742_s1 + $0x88] sm:$0xff]  ;;  %v239_v28 = vld [vmem:[%s1742_s1 + $0x80] sm:$0xff]  ;;  %s1282_s5 = smov 8  }
   0xf   :  { %v1193_v29 = vld [vmem:[%s1743_s2 + $0x1a] ss:$0 sm:$0xff]  ;;  %v1393_v33 = vld [vmem:[%s1743_s2 + $0x8] sm:$0xff]  ;;  %v1400_v37 = vld [vmem:[%s1743_s2 + $0x10] sm:$0xff] }
  0x10   :  { %106 = vmatpush.msra.mxu2 %v30_v12  ;;  %v238_v41 = vld [vmem:[%s1742_s1 + $0x78] sm:$0xff]  ;;  %v237_v42 = vld [vmem:[%s1742_s1 + $0x70] sm:$0xff]  ;;  %v236_v43 = vld [vmem:[%s1742_s1 + $0x68] sm:$0xff] }
  0x11   :  { %1126 = vmatmul.msk.f32.gmra.mxu1 %vm37_vm0, %v1339_v9  ;;  %v235_v44 = vld [vmem:[%s1742_s1 + $0x60] sm:$0xff]  ;;  %v1194_v50 = vld [vmem:[%s1743_s2 + $0x1c] ss:$0 sm:$0xff]  ;;  %v245_v63 = vld [vmem:[%s1742_s1 + $0xb0] sm:$0xff] }
  0x12   :  { %1124 = vmatmul.msk.f32.gmra.mxu0 %vm37_vm0, %v1339_v9  ;;  %107 = vmatpush.msra.mxu2 %v29_v13  ;;  %v203_v45 = vld [vmem:[%s1742_s1 + $0x180] sm:$0xff]  ;;  %v246_v62 = vld [vmem:[%s1742_s1 + $0xb8] sm:$0xff]  ;;  %v244_v0 = vld [vmem:[%s1742_s1 + $0xa8] sm:$0xff] }
  0x13   :  { %1127 = vmatmul.msk.f32.vlgmr.msra.gmra.mxu2 %vm37_vm0, %v1324_v6  ;;  %225 = vmatpush.msrb.mxu1 %v203_v45  ;;  %v243_v2 = vld [vmem:[%s1742_s1 + $0xa0] sm:$0xff]  ;;  %v1195_v12 = vld [vmem:[%s1743_s2 + $0x1b] ss:$0 sm:$0xff] }
  0x14   :  { %263 = vmatpush.msrb.mxu2 %v238_v41 }
  0x16   :  { %264 = vmatpush.msrb.mxu2 %v237_v42 }
  0x18   :  { %265 = vmatpush.msrb.mxu2 %v236_v43 }
  0x1a   :  { %266 = vmatpush.msrb.mxu2 %v235_v44 }
  0x1b   :  { %1128 = vmatmul.msk.f32.gmra.mxu2 %vm37_vm0, %v1339_v9 }
  0x23   :  { %1137 = vmatmul.msk.f32.vlgmr.msrb.gmra.mxu2 %vm37_vm0, %v1324_v6 }
  0x2b   :  { %1138 = vmatmul.msk.f32.gmra.mxu2 %vm37_vm0, %v1339_v9 }
  0x86   :  { %v85_v14 = vpop.f32.mrf.mxu1 }
  0x87   :  { %v61_v18 = vpop.f32.mrf.mxu0  ;;  %v86_v20 = vadd.f32 %v1191_v15, %v85_v14 }
  0x88   :  { %v62_v21 = vadd.f32 %v1192_v19, %v61_v18  ;;  %v445_v18 = vld [vmem:[%s1742_s1 + $0xe8] sm:$0xff] }
  0x8e   :  { %v88_v16 = vpop.f32.mrf.mxu1 }
  0x8f   :  { %v89_v17 = vadd.f32 %v1191_v15, %v88_v16  ;;  %v64_v22 = vpop.f32.mrf.mxu0  ;;  %v447_v16 = vld [vmem:[%s1742_s1 + $0xf8] sm:$0xff] }
  0x90   :  { %v65_v23 = vadd.f32 %v1192_v19, %v64_v22  ;;  %v1197_v22 = vld [vmem:[%s1743_s2 + $0x1d] ss:$0 sm:$0xff] }
  0x91   :  { %1129 = vmatpush.xpose.msk.msra.mxu3 %vm115_vm1, %v89_v17  ;;  %v446_v17 = vld [vmem:[%s1742_s1 + $0xf0] sm:$0xff] }
  0x95   :  { %1130 = vmatpush.xpose.msk.msra.mxu3 %vm115_vm1, %v86_v20 }
  0x96   :  { %v109_v27 = vpop.f32.mrf.mxu2 }
  0x97   :  { %v110_v31 = vadd.f32 %v1193_v29, %v109_v27 }
  0x98   :  { %1131 = vmatmul.msk.f32.vlgmr.msra.gmra.mxu3 %vm115_vm1, %v62_v21  ;;  %v444_v21 = vld [vmem:[%s1742_s1 + $0xe0] sm:$0xff] }
  0x99   :  { %287 = vmatpush.msrb.mxu3 %v242_v24 }
  0x9b   :  { %288 = vmatpush.msrb.mxu3 %v241_v25 }
  0x9d   :  { %289 = vmatpush.msrb.mxu3 %v240_v26 }
  0x9e   :  { %v112_v30 = vpop.f32.mrf.mxu2 }
  0x9f   :  { %290 = vmatpush.msrb.mxu3 %v239_v28  ;;  %v113_v32 = vadd.f32 %v1193_v29, %v112_v30 }
  0xa0   :  { %1132 = vmatmul.msk.f32.gmra.mxu3 %vm115_vm1, %v65_v23 }
  0xa1   :  { %190 = vmatpush.msrb.mxu0 %v113_v32 }
  0xa3   :  { %191 = vmatpush.msrb.mxu0 %v110_v31 }
  0xa5   :  { %311 = vmatpush.msra.mxu0 %v246_v62 }
  0xa6   :  { %v268_v11 = vpop.f32.mrf.mxu2 }
  0xa7   :  { %312 = vmatpush.msra.mxu0 %v245_v63  ;;  %v269_v13 = vadd.f32 %v1195_v12, %v268_v11  ;;  %v652_v11 = vld [vmem:[%s1742_s1 + $0x158] sm:$0xff] }
  0xa8   :  { %1139 = vmatmul.msk.f32.vlgmr.msrb.gmra.mxu3 %vm37_vm0, %v1324_v6 }
  0xa9   :  { %313 = vmatpush.msra.mxu0 %v244_v0 }
  0xab   :  { %314 = vmatpush.msra.mxu0 %v243_v2 }
  0xae   :  { %v271_v14 = vpop.f32.mrf.mxu2 }
  0xaf   :  { %v272_v15 = vadd.f32 %v1195_v12, %v271_v14  ;;  %v651_v12 = vld [vmem:[%s1742_s1 + $0x150] sm:$0xff] }
  0xb0   :  { %1140 = vmatmul.msk.f32.gmra.mxu3 %vm37_vm0, %v1339_v9 }
 0x11b   :  { %v145_v34 = vpop.f32.mrf.mxu3 }
 0x11c   :  { %v146_v35 = vadd.f32 %v145_v34, %v1393_v33  ;;  %v443_v34 = vld [vmem:[%s1742_s1 + $0xd8] sm:$0xff] }
 0x11e   :  { %v152_v36 = vsel %vm151_vm2, %v146_v35, -inf }
 0x11f   :  { %153 = vmax.xlane.f32.xlu0 %v152_v36  ;;  %v441_v36 = vld [vmem:[%s1742_s1 + $0xc8] sm:$0xff] }
 0x123   :  { %v148_v38 = vpop.f32.mrf.mxu3 }
 0x124   :  { %v149_v39 = vadd.f32 %v148_v38, %v1400_v37  ;;  %v440_v38 = vld [vmem:[%s1742_s1 + $0xc0] sm:$0xff] }
 0x126   :  { %v155_v40 = vsel %vm151_vm2, %v149_v39, -inf }
 0x127   :  { %156 = vmax.xlane.f32.xlu0 %v155_v40 }
 0x12b   :  { %v292_v47 = vpop.f32.mrf.mxu3 }
 0x12c   :  { %v293_v57 = vadd.f32 %v1194_v50, %v292_v47 }
 0x133   :  { %v295_v52 = vpop.f32.mrf.mxu3 }
 0x134   :  { %v296_v54 = vadd.f32 %v1194_v50, %v295_v52  ;;  %v1198_v50 = vld [vmem:[%s1743_s2 + $0x1f] ss:$0 sm:$0xff] }
 0x136   :  { %1143 = vmatpush.xpose.msk.msra.mxu1 %vm115_vm1, %v296_v54 }
 0x13a   :  { %1144 = vmatpush.xpose.msk.msra.mxu1 %vm115_vm1, %v293_v57  ;;  %v450_v57 = vld [vmem:[%s1742_s1 + $0x110] sm:$0xff] }
 0x192   :  { %v154_v46 = vpop.xlane.xlu0 %153 }
 0x193   :  { %v158_v48 = vsub.f32 %v146_v35, %v154_v46  ;;  %v442_v35 = vld [vmem:[%s1742_s1 + $0xd0] sm:$0xff] }
 0x195   :  { %v160_v49 = vmul.f32 1.442695, %v158_v48 }
 0x197   :  { %1211 = vpow2.f32 %v160_v49 }
 0x19a   :  { %v157_v51 = vpop.xlane.xlu0 %156 }
 0x19b   :  { %v159_v53 = vsub.f32 %v149_v39, %v157_v51  ;;  %v408_v51 = vld [vmem:[%s1742_s1 + $0x188] sm:$0xff] }
 0x19c   :  { %430 = vmatpush.msra.mxu3 %v408_v51 }
 0x19d   :  { %v1212_v55 = vpop.eup %1211  ;;  %v162_v56 = vmul.f32 1.442695, %v159_v53 }
 0x19e   :  { %1133 = vmatmul.msk.f32.vlgmr.msrb.gmra.mxu0 %vm151_vm2, %v1212_v55  ;;  %v164_v58 = vsel %vm151_vm2, %v1212_v55, 0.0 }
 0x19f   :  { %1213 = vpow2.f32 %v162_v56  ;;  %165 = vadd.xlane.f32.xlu1 %v164_v58  ;;  %468 = vmatpush.msrb.mxu0 %v443_v34  ;;  %v451_v56 = vld [vmem:[%s1742_s1 + $0x118] sm:$0xff]  ;;  %v449_v58 = vld [vmem:[%s1742_s1 + $0x108] sm:$0xff]  ;;  %v647_v34 = vld [vmem:[%s1742_s1 + $0x130] sm:$0xff] }
 0x1a1   :  { %469 = vmatpush.msrb.mxu0 %v442_v35  ;;  %v646_v35 = vld [vmem:[%s1742_s1 + $0x128] sm:$0xff] }
 0x1a3   :  { %470 = vmatpush.msrb.mxu0 %v441_v36  ;;  %v645_v36 = vld [vmem:[%s1742_s1 + $0x120] sm:$0xff] }
 0x1a5   :  { %v1214_v59 = vpop.eup %1213  ;;  %471 = vmatpush.msrb.mxu0 %v440_v38  ;;  %v613_v38 = vld [vmem:[%s1742_s1 + $0x190] sm:$0xff] }
 0x1a6   :  { %1134 = vmatmul.msk.f32.gmra.mxu0 %vm151_vm2, %v1214_v59  ;;  %v167_v60 = vsel %vm151_vm2, %v1214_v59, 0.0 }
 0x1a7   :  { %168 = vadd.xlane.f32.xlu1 %v167_v60  ;;  %v448_v60 = vld [vmem:[%s1742_s1 + $0x100] sm:$0xff] }
 0x1ae   :  { %1141 = vmatmul.msk.f32.vlgmr.msra.gmra.mxu0 %vm37_vm0, %v1324_v6 }
 0x1b6   :  { %1142 = vmatmul.msk.f32.gmra.mxu0 %vm37_vm0, %v1339_v9 }
 0x1be   :  { %1151 = vmatmul.msk.f32.vlgmr.msrb.gmra.mxu0 %vm37_vm0, %v1324_v6 }
 0x1c6   :  { %1152 = vmatmul.msk.f32.gmra.mxu0 %vm37_vm0, %v1339_v9 }
 0x212   :  { %v166_v61 = vpop.xlane.xlu1 %165 }
 0x213   :  { %1215 = vrcp.f32 %v166_v61 }
 0x219   :  { %v1216_v3 = vpop.eup %1215 }
 0x21a   :  { %v169_v1 = vpop.xlane.xlu1 %168 }
 0x21b   :  { %v193_v4 = vpop.f32.mrf.mxu0  ;;  %1217 = vrcp.f32 %v169_v1 }
 0x21c   :  { %v201_v5 = vmul.f32 %v1216_v3, %v193_v4  ;;  %v1199_v4 = vld [vmem:[%s1743_s2 + $0x1e] ss:$0 sm:$0xff] }
 0x21e   :  { %1135 = vmatmul.msk.f32.vlgmr.msrb.gmra.mxu1 %vm115_vm1, %v201_v5 }
 0x21f   :  { %492 = vmatpush.msrb.mxu1 %v447_v16 }
 0x221   :  { %v1218_v7 = vpop.eup %1217  ;;  %493 = vmatpush.msrb.mxu1 %v446_v17  ;;  %v649_v17 = vld [vmem:[%s1742_s1 + $0x140] sm:$0xff] }
 0x223   :  { %v196_v8 = vpop.f32.mrf.mxu0  ;;  %494 = vmatpush.msrb.mxu1 %v445_v18 }
 0x224   :  { %v202_v10 = vmul.f32 %v1218_v7, %v196_v8 }
 0x225   :  { %495 = vmatpush.msrb.mxu1 %v444_v21 }
 0x226   :  { %1136 = vmatmul.msk.f32.gmra.mxu1 %vm115_vm1, %v202_v10  ;;  %v1196_v10 = vld [vmem:[%s1743_s2] ss:$0 sm:$0xff] }
 0x22b   :  { %v316_v20 = vpop.f32.mrf.mxu0 }
 0x22c   :  { %v317_v25 = vadd.f32 %v1197_v22, %v316_v20  ;;  %v1200_v20 = vld [vmem:[%s1743_s2 + $0x20] ss:$0 sm:$0xff] }
 0x22e   :  { %1145 = vmatmul.msk.f32.vlgmr.msra.gmra.mxu1 %vm115_vm1, %v269_v13  ;;  %v650_v13 = vld [vmem:[%s1742_s1 + $0x148] sm:$0xff] }
 0x22f   :  { %635 = vmatpush.msra.mxu1 %v613_v38 }
 0x233   :  { %v319_v24 = vpop.f32.mrf.mxu0 }
 0x234   :  { %v320_v26 = vadd.f32 %v1197_v22, %v319_v24 }
 0x236   :  { %1146 = vmatmul.msk.f32.gmra.mxu1 %vm115_vm1, %v272_v15  ;;  %395 = vmatpush.msra.mxu2 %v320_v26 }
 0x238   :  { %396 = vmatpush.msra.mxu2 %v317_v25 }
 0x23a   :  { %516 = vmatpush.msrb.mxu2 %v451_v56  ;;  %v655_v56 = vld [vmem:[%s1742_s1 + $0x170] sm:$0xff] }
 0x23b   :  { %v473_v3 = vpop.f32.mrf.mxu0 }
 0x23c   :  { %517 = vmatpush.msrb.mxu2 %v450_v57  ;;  %v474_v5 = vadd.f32 %v1199_v4, %v473_v3  ;;  %v654_v57 = vld [vmem:[%s1742_s1 + $0x168] sm:$0xff]  ;;  %v1202_v3 = vld [vmem:[%s1743_s2 + $0x21] ss:$0 sm:$0xff] }
 0x23e   :  { %1153 = vmatmul.msk.f32.vlgmr.msrb.gmra.mxu1 %vm37_vm0, %v1324_v6  ;;  %518 = vmatpush.msrb.mxu2 %v449_v58 }
 0x240   :  { %519 = vmatpush.msrb.mxu2 %v448_v60 }
 0x243   :  { %v476_v7 = vpop.f32.mrf.mxu0 }
 0x244   :  { %v477_v8 = vadd.f32 %v1199_v4, %v476_v7 }
 0x246   :  { %1154 = vmatmul.msk.f32.gmra.mxu1 %vm37_vm0, %v1339_v9 }
 0x29b   :  { %v1464_v19 = vpop.f32.mrf.mxu1 }
 0x29c   :  { %v233_v14 = vadd.f32 %v1196_v10, %v1464_v19 }
 0x2a3   :  { %v1474_v23 = vpop.f32.mrf.mxu1 }
 0x2a4   :  { %v234_v19 = vadd.f32 %v1196_v10, %v1474_v23 }
 0x2ab   :  { %v351_v27 = vpop.f32.mrf.mxu1 }
 0x2ac   :  { %v352_v28 = vadd.f32 %v351_v27, %v1393_v33 }
 0x2ae   :  { %v357_v29 = vsel %vm151_vm2, %v352_v28, -inf }
 0x2af   :  { %358 = vmax.xlane.f32.xlu2 %v357_v29 }
 0x2b3   :  { %v354_v30 = vpop.f32.mrf.mxu1 }
 0x2b4   :  { %v355_v31 = vadd.f32 %v354_v30, %v1400_v37 }
 0x2b6   :  { %v360_v32 = vsel %vm151_vm2, %v355_v31, -inf }
 0x2b7   :  { %361 = vmax.xlane.f32.xlu2 %v360_v32  ;;  %v648_v32 = vld [vmem:[%s1742_s1 + $0x138] sm:$0xff] }
 0x2bb   :  { %v497_v49 = vpop.f32.mrf.mxu1 }
 0x2bc   :  { %v498_v54 = vadd.f32 %v1198_v50, %v497_v49 }
 0x2c3   :  { %v500_v52 = vpop.f32.mrf.mxu1 }
 0x2c4   :  { %v501_v53 = vadd.f32 %v1198_v50, %v500_v52 }
 0x2c6   :  { %1157 = vmatpush.xpose.msk.msrb.mxu3 %vm115_vm1, %v501_v53 }
 0x2ca   :  { %1158 = vmatpush.xpose.msk.msrb.mxu3 %vm115_vm1, %v498_v54 }
 0x322   :  { %v359_v39 = vpop.xlane.xlu2 %358 }
 0x323   :  { %v363_v40 = vsub.f32 %v352_v28, %v359_v39 }
 0x325   :  { %v365_v41 = vmul.f32 1.442695, %v363_v40 }
 0x327   :  { %1219 = vpow2.f32 %v365_v41 }
 0x32a   :  { %v362_v42 = vpop.xlane.xlu2 %361 }
 0x32b   :  { %v364_v43 = vsub.f32 %v355_v31, %v362_v42 }
 0x32d   :  { %v1220_v44 = vpop.eup %1219  ;;  %v367_v45 = vmul.f32 1.442695, %v364_v43  ;;  %v1201_v43 = vld [vmem:[%s1743_s2 + $0x22] ss:$0 sm:$0xff] }
 0x32e   :  { %1147 = vmatmul.msk.f32.vlgmr.msra.gmra.mxu2 %vm151_vm2, %v1220_v44  ;;  %v369_v46 = vsel %vm151_vm2, %v1220_v44, 0.0 }
 0x32f   :  { %1221 = vpow2.f32 %v367_v45  ;;  %370 = vadd.xlane.f32.xlu0 %v369_v46  ;;  %673 = vmatpush.msra.mxu2 %v648_v32  ;;  %v818_v32 = vld [vmem:[%s1742_s1 + $0x198] sm:$0xff] }
 0x331   :  { %674 = vmatpush.msra.mxu2 %v647_v34 }
 0x333   :  { %675 = vmatpush.msra.mxu2 %v646_v35 }
 0x335   :  { %v1222_v47 = vpop.eup %1221  ;;  %676 = vmatpush.msra.mxu2 %v645_v36 }
 0x336   :  { %1148 = vmatmul.msk.f32.gmra.mxu2 %vm151_vm2, %v1222_v47  ;;  %v372_v48 = vsel %vm151_vm2, %v1222_v47, 0.0 }
 0x337   :  { %373 = vadd.xlane.f32.xlu1 %v372_v48 }
 0x33e   :  { %1155 = vmatmul.msk.f32.vlgmr.msrb.gmra.mxu2 %vm37_vm0, %v1324_v6 }
 0x346   :  { %1156 = vmatmul.msk.f32.gmra.mxu2 %vm37_vm0, %v1339_v9 }
 0x34e   :  { %1165 = vmatmul.msk.f32.vlgmr.msra.gmra.mxu2 %vm37_vm0, %v1324_v6 }
 0x356   :  { %1166 = vmatmul.msk.f32.gmra.mxu2 %vm37_vm0, %v1339_v9 }
 0x3a2   :  { %v371_v55 = vpop.xlane.xlu0 %370 }
 0x3a3   :  { %1223 = vrcp.f32 %v371_v55  ;;  %v656_v55 = vld [vmem:[%s1742_s1 + $0x178] sm:$0xff] }
 0x3a9   :  { %v1224_v61 = vpop.eup %1223 }
 0x3aa   :  { %v374_v59 = vpop.xlane.xlu1 %373 }
 0x3ab   :  { %1225 = vrcp.f32 %v374_v59  ;;  %v653_v59 = vld [vmem:[%s1742_s1 + $0x160] sm:$0xff] }
 0x3b1   :  { %v398_v62 = vpop.f32.mrf.mxu2  ;;  %v1226_v0 = vpop.eup %1225 }
 0x3b2   :  { %v406_v63 = vmul.f32 %v1224_v61, %v398_v62 }
 0x3b4   :  { %1149 = vmatmul.msk.f32.vlgmr.msra.gmra.mxu3 %vm115_vm1, %v406_v63 }
 0x3b5   :  { %697 = vmatpush.msra.mxu3 %v652_v11 }
 0x3b7   :  { %698 = vmatpush.msra.mxu3 %v651_v12  ;;  %v1203_v12 = vld [vmem:[%s1743_s2 + $0x23] ss:$0 sm:$0xff] }
 0x3b9   :  { %v401_v1 = vpop.f32.mrf.mxu2  ;;  %699 = vmatpush.msra.mxu3 %v650_v13 }
 0x3ba   :  { %v407_v2 = vmul.f32 %v1226_v0, %v401_v1 }
 0x3bb   :  { %700 = vmatpush.msra.mxu3 %v649_v17 }
 0x3bc   :  { %1150 = vmatmul.msk.f32.gmra.mxu3 %vm115_vm1, %v407_v2 }
 0x3c1   :  { %v521_v16 = vpop.f32.mrf.mxu2 }
 0x3c2   :  { %v522_v25 = vadd.f32 %v1200_v20, %v521_v16 }
 0x3c4   :  { %1159 = vmatmul.msk.f32.vlgmr.msrb.gmra.mxu3 %vm115_vm1, %v474_v5 }
 0x3c5   :  { %840 = vmatpush.msrb.mxu3 %v818_v32 }
 0x3c9   :  { %v524_v22 = vpop.f32.mrf.mxu2 }
 0x3ca   :  { %v525_v26 = vadd.f32 %v1200_v20, %v524_v22 }
 0x3cc   :  { %1160 = vmatmul.msk.f32.gmra.mxu3 %vm115_vm1, %v477_v8  ;;  %600 = vmatpush.msra.mxu0 %v525_v26 }
 0x3ce   :  { %601 = vmatpush.msra.mxu0 %v522_v25 }
 0x3d0   :  { %721 = vmatpush.msrb.mxu0 %v656_v55 }
 0x3d1   :  { %v678_v2 = vpop.f32.mrf.mxu2 }
 0x3d2   :  { %722 = vmatpush.msrb.mxu0 %v655_v56  ;;  %v679_v4 = vadd.f32 %v1202_v3, %v678_v2  ;;  %v914_v2 = vld [vmem:[%s1742_s1 + $0x1f8] sm:$0xff] }
 0x3d4   :  { %1167 = vmatmul.msk.f32.vlgmr.msra.gmra.mxu3 %vm37_vm0, %v1324_v6  ;;  %723 = vmatpush.msrb.mxu0 %v654_v57 }
 0x3d6   :  { %724 = vmatpush.msrb.mxu0 %v653_v59 }
 0x3d9   :  { %v681_v5 = vpop.f32.mrf.mxu2 }
 0x3da   :  { %v682_v7 = vadd.f32 %v1202_v3, %v681_v5  ;;  %v918_v3 = vld [vmem:[%s1742_s1 + $0x218] sm:$0xff]  ;;  %v917_v5 = vld [vmem:[%s1742_s1 + $0x210] sm:$0xff] }
 0x3dc   :  { %1168 = vmatmul.msk.f32.gmra.mxu3 %vm37_vm0, %v1339_v9 }
 0x437   :  { %v432_v15 = vpop.f32.mrf.mxu3 }
 0x438   :  { %v1549_v18 = vadd.f32 %v432_v15, %v233_v14 }
 0x43f   :  { %v435_v21 = vpop.f32.mrf.mxu3 }
 0x440   :  { %v1557_v24 = vadd.f32 %v435_v21, %v234_v19 }
 0x447   :  { %v556_v27 = vpop.f32.mrf.mxu3 }
 0x448   :  { %v557_v28 = vadd.f32 %v556_v27, %v1393_v33 }
 0x44a   :  { %v562_v29 = vsel %vm151_vm2, %v557_v28, -inf }
 0x44b   :  { %563 = vmax.xlane.f32.xlu2 %v562_v29 }
 0x44f   :  { %v559_v30 = vpop.f32.mrf.mxu3 }
 0x450   :  { %v560_v23 = vadd.f32 %v559_v30, %v1400_v37 }
 0x452   :  { %v565_v31 = vsel %vm151_vm2, %v560_v23, -inf }
 0x453   :  { %566 = vmax.xlane.f32.xlu0 %v565_v31 }
 0x457   :  { %v702_v40 = vpop.f32.mrf.mxu3 }
 0x458   :  { %v703_v50 = vadd.f32 %v1201_v43, %v702_v40 }
 0x45f   :  { %v705_v45 = vpop.f32.mrf.mxu3 }
 0x460   :  { %v706_v47 = vadd.f32 %v1201_v43, %v705_v45 }
 0x462   :  { %1171 = vmatpush.xpose.msk.msrb.mxu1 %vm115_vm1, %v706_v47 }
 0x466   :  { %1172 = vmatpush.xpose.msk.msrb.mxu1 %vm115_vm1, %v703_v50 }
 0x4be   :  { %v564_v39 = vpop.xlane.xlu2 %563 }
 0x4bf   :  { %v568_v41 = vsub.f32 %v557_v28, %v564_v39 }
 0x4c1   :  { %v570_v42 = vmul.f32 1.442695, %v568_v41 }
 0x4c3   :  { %1227 = vpow2.f32 %v570_v42 }
 0x4c6   :  { %v567_v44 = vpop.xlane.xlu0 %566 }
 0x4c7   :  { %v569_v46 = vsub.f32 %v560_v23, %v567_v44 }
 0x4c9   :  { %v1228_v48 = vpop.eup %1227  ;;  %v572_v49 = vmul.f32 1.442695, %v569_v46 }
 0x4ca   :  { %1161 = vmatmul.msk.f32.vlgmr.msra.gmra.mxu0 %vm151_vm2, %v1228_v48  ;;  %v574_v51 = vsel %vm151_vm2, %v1228_v48, 0.0 }
 0x4cb   :  { %1229 = vpow2.f32 %v572_v49  ;;  %575 = vadd.xlane.f32.xlu1 %v574_v51  ;;  %v1279_v51 = vmov 32.0   ;;  %939 = vmatpush.msra.mxu0 %v914_v2 }
 0x4d1   :  { %v1230_v52 = vpop.eup %1229 }
 0x4d2   :  { %1162 = vmatmul.msk.f32.gmra.mxu0 %vm151_vm2, %v1230_v52  ;;  %v577_v53 = vsel %vm151_vm2, %v1230_v52, 0.0 }
 0x4d3   :  { %578 = vadd.xlane.f32.xlu2 %v577_v53 }
 0x4da   :  { %1169 = vmatmul.msk.f32.vlgmr.msrb.gmra.mxu0 %vm37_vm0, %v1324_v6 }
 0x4e2   :  { %1170 = vmatmul.msk.f32.gmra.mxu0 %vm37_vm0, %v1339_v9 }
 0x53e   :  { %v576_v54 = vpop.xlane.xlu1 %575 }
 0x53f   :  { %1231 = vrcp.f32 %v576_v54 }
 0x545   :  { %v1232_v60 = vpop.eup %1231 }
 0x546   :  { %v579_v58 = vpop.xlane.xlu2 %578 }
 0x547   :  { %v603_v61 = vpop.f32.mrf.mxu0  ;;  %1233 = vrcp.f32 %v579_v58 }
 0x548   :  { %v611_v62 = vmul.f32 %v1232_v60, %v603_v61 }
 0x54a   :  { %1163 = vmatmul.msk.f32.vlgmr.msra.gmra.mxu1 %vm115_vm1, %v611_v62 }
 0x54b   :  { %966 = vmatpush.msra.mxu1 %v918_v3 }
 0x54d   :  { %v1234_v63 = vpop.eup %1233  ;;  %967 = vmatpush.msra.mxu1 %v917_v5 }
 0x54f   :  { %v606_v0 = vpop.f32.mrf.mxu0 }
 0x550   :  { %v612_v1 = vmul.f32 %v1234_v63, %v606_v0 }
 0x552   :  { %1164 = vmatmul.msk.f32.gmra.mxu1 %vm115_vm1, %v612_v1 }
 0x557   :  { %v726_v10 = vpop.f32.mrf.mxu0 }
 0x558   :  { %v727_v16 = vadd.f32 %v1203_v12, %v726_v10  ;;  %v911_v10 = vld [vmem:[%s1742_s1 + $0x1e0] sm:$0xff] }
 0x55a   :  { %1173 = vmatmul.msk.f32.vlgmr.msrb.gmra.mxu1 %vm115_vm1, %v679_v4  ;;  %v913_v4 = vld [vmem:[%s1742_s1 + $0x1f0] sm:$0xff] }
 0x55b   :  { %940 = vmatpush.msra.mxu0 %v913_v4 }
 0x55f   :  { %v729_v14 = vpop.f32.mrf.mxu0 }
 0x560   :  { %v730_v17 = vadd.f32 %v1203_v12, %v729_v14 }
 0x562   :  { %1174 = vmatmul.msk.f32.gmra.mxu1 %vm115_vm1, %v682_v7  ;;  %805 = vmatpush.msrb.mxu2 %v730_v17  ;;  %v912_v7 = vld [vmem:[%s1742_s1 + $0x1e8] sm:$0xff]  ;;  %v985_v17 = vld [vmem:[%s1742_s1 + $0x1d0] sm:$0xff] }
 0x563   :  { %941 = vmatpush.msra.mxu0 %v912_v7 }
 0x564   :  { %806 = vmatpush.msrb.mxu2 %v727_v16  ;;  %v982_v16 = vld [vmem:[%s1742_s1 + $0x1b8] sm:$0xff] }
 0x565   :  { %942 = vmatpush.msra.mxu0 %v911_v10  ;;  %1034 = vmatpush.msra.mxu3 %v982_v16 }
 0x5c7   :  { %v637_v8 = vpop.f32.mrf.mxu1 }
 0x5c8   :  { %v643_v11 = vadd.f32 %v637_v8, %v1549_v18  ;;  %v916_v8 = vld [vmem:[%s1742_s1 + $0x208] sm:$0xff] }
 0x5c9   :  { %968 = vmatpush.msra.mxu1 %v916_v8 }
 0x5cf   :  { %v640_v13 = vpop.f32.mrf.mxu1 }
 0x5d0   :  { %v644_v15 = vadd.f32 %v640_v13, %v1557_v24 }
 0x5d7   :  { %v761_v20 = vpop.f32.mrf.mxu1 }
 0x5d8   :  { %v762_v19 = vadd.f32 %v761_v20, %v1393_v33  ;;  %v981_v20 = vld [vmem:[%s1742_s1 + $0x1b0] sm:$0xff] }
 0x5d9   :  { %1035 = vmatpush.msra.mxu3 %v981_v20 }
 0x5da   :  { %v767_v21 = vsel %vm151_vm2, %v762_v19, -inf }
 0x5db   :  { %768 = vmax.xlane.f32.xlu0 %v767_v21  ;;  %v980_v21 = vld [vmem:[%s1742_s1 + $0x1a8] sm:$0xff] }
 0x5dc   :  { %1036 = vmatpush.msra.mxu3 %v980_v21 }
 0x5df   :  { %v764_v22 = vpop.f32.mrf.mxu1 }
 0x5e0   :  { %v765_v18 = vadd.f32 %v764_v22, %v1400_v37 }
 0x5e2   :  { %v770_v25 = vsel %vm151_vm2, %v765_v18, -inf }
 0x5e3   :  { %771 = vmax.xlane.f32.xlu1 %v770_v25 }
 0x64e   :  { %v769_v26 = vpop.xlane.xlu0 %768 }
 0x64f   :  { %v773_v27 = vsub.f32 %v762_v19, %v769_v26  ;;  %v984_v19 = vld [vmem:[%s1742_s1 + $0x1c8] sm:$0xff] }
 0x651   :  { %v775_v28 = vmul.f32 1.442695, %v773_v27 }
 0x653   :  { %1235 = vpow2.f32 %v775_v28 }
 0x656   :  { %v772_v24 = vpop.xlane.xlu1 %771 }
 0x657   :  { %v774_v29 = vsub.f32 %v765_v18, %v772_v24 }
 0x659   :  { %v1236_v30 = vpop.eup %1235  ;;  %v777_v23 = vmul.f32 1.442695, %v774_v29 }
 0x65a   :  { %1175 = vmatmul.msk.f32.vlgmr.msrb.gmra.mxu2 %vm151_vm2, %v1236_v30  ;;  %v779_v33 = vsel %vm151_vm2, %v1236_v30, 0.0 }
 0x65b   :  { %1237 = vpow2.f32 %v777_v23  ;;  %780 = vadd.xlane.f32.xlu2 %v779_v33 }
 0x661   :  { %v1238_v31 = vpop.eup %1237 }
 0x662   :  { %1176 = vmatmul.msk.f32.gmra.mxu2 %vm151_vm2, %v1238_v31  ;;  %v782_v37 = vsel %vm151_vm2, %v1238_v31, 0.0  ;;  %v1204_v31 = vld [vmem:[%s1743_s2 + $0x1] ss:$0 sm:$0xff] }
 0x663   :  { %783 = vadd.xlane.f32.xlu0 %v782_v37 }
 0x6ce   :  { %v781_v34 = vpop.xlane.xlu2 %780 }
 0x6cf   :  { %1239 = vrcp.f32 %v781_v34 }
 0x6d5   :  { %v1240_v36 = vpop.eup %1239 }
 0x6d6   :  { %v784_v35 = vpop.xlane.xlu0 %783 }
 0x6d7   :  { %1241 = vrcp.f32 %v784_v35  ;;  %v1205_v35 = vld [vmem:[%s1743_s2 + $0x2] ss:$0 sm:$0xff] }
 0x6d8   :  { %1243 = vrcp.f32 %v1279_v51 }
 0x6dd   :  { %v808_v38 = vpop.f32.mrf.mxu2  ;;  %v1242_v40 = vpop.eup %1241 }
 0x6de   :  { %v816_v39 = vmul.f32 %v1240_v36, %v808_v38  ;;  %v1244_v52 = vpop.eup %1243 }
 0x6df   :  { %v859_v53 = vmul.f32 32.0, %v1244_v52  ;;  %vm863_vm3 = vweird.f32 %v1244_v52 }
 0x6e0   :  { %1177 = vmatmul.msk.f32.vlgmr.msrb.gmra.mxu3 %vm115_vm1, %v816_v39 }
 0x6e1   :  { %v860_v54 = vsub.f32 1.0, %v859_v53 }
 0x6e3   :  { %v861_v55 = vmul.f32 %v1244_v52, %v860_v54 }
 0x6e5   :  { %v811_v41 = vpop.f32.mrf.mxu2  ;;  %v862_v56 = vadd.f32 %v1244_v52, %v861_v55 }
 0x6e6   :  { %v817_v42 = vmul.f32 %v1242_v40, %v811_v41 }
 0x6e7   :  { %v1638_v57 = vsel %vm863_vm3, %v1244_v52, %v862_v56 }
 0x6e8   :  { %1178 = vmatmul.msk.f32.gmra.mxu3 %vm115_vm1, %v817_v42 }
 0x763   :  { %v842_v43 = vpop.f32.mrf.mxu3 }
 0x764   :  { %v848_v44 = vadd.f32 %v842_v43, %v643_v11  ;;  %v915_v11 = vld [vmem:[%s1742_s1 + $0x200] sm:$0xff] }
 0x765   :  { %969 = vmatpush.msra.mxu1 %v915_v11 }
 0x766   :  { %v850_v45 = vadd.f32 %v848_v44, %v1324_v6 }
 0x768   :  { %v852_v46 = vsel %vm37_vm0, %v850_v45, 0.0 }
 0x769   :  { %853 = vadd.xlane.f32.xlu1 %v852_v46  ;;  %v983_v46 = vld [vmem:[%s1742_s1 + $0x1c0] sm:$0xff] }
 0x76b   :  { %v845_v47 = vpop.f32.mrf.mxu3 }
 0x76c   :  { %v849_v48 = vadd.f32 %v845_v47, %v644_v15  ;;  %v986_v15 = vld [vmem:[%s1742_s1 + $0x1d8] sm:$0xff]  ;;  %v979_v47 = vld [vmem:[%s1742_s1 + $0x1a0] sm:$0xff] }
 0x76d   :  { %1005 = vmatpush.msra.mxu2 %v986_v15  ;;  %1037 = vmatpush.msra.mxu3 %v979_v47 }
 0x76e   :  { %v851_v49 = vadd.f32 %v849_v48, %v1339_v9  ;;  %v1206_v48 = vld [vmem:[%s1743_s2 + $0x3] ss:$0 sm:$0xff] }
 0x76f   :  { %1006 = vmatpush.msra.mxu2 %v985_v17 }
 0x770   :  { %v855_v50 = vsel %vm37_vm0, %v851_v49, 0.0 }
 0x771   :  { %856 = vadd.xlane.f32.xlu2 %v855_v50  ;;  %1007 = vmatpush.msra.mxu2 %v984_v19 }
 0x773   :  { %1008 = vmatpush.msra.mxu2 %v983_v46 }
 0x7dc   :  { %v854_v6 = vpop.xlane.xlu1 %853 }
 0x7dd   :  { %v865_v58 = vmul.f32 %v1638_v57, %v854_v6 }
 0x7df   :  { %v867_v59 = vsub.f32 %v850_v45, %v865_v58 }
 0x7e1   :  { %v869_v60 = vmul.f32 %v867_v59, %v867_v59 }
 0x7e3   :  { %v871_v9 = vsel %vm37_vm0, %v869_v60, 0.0 }
 0x7e4   :  { %872 = vadd.xlane.f32.xlu0 %v871_v9  ;;  %v857_v61 = vpop.xlane.xlu2 %856 }
 0x7e5   :  { %v866_v62 = vmul.f32 %v1638_v57, %v857_v61  ;;  %v1208_v61 = vld [vmem:[%s1743_s2 + $0x5] ss:$0 sm:$0xff] }
 0x7e7   :  { %v1643_v63 = vsub.f32 %v851_v49, %v866_v62  ;;  %v1207_v49 = vld [vmem:[%s1743_s2 + $0x4] ss:$0 sm:$0xff] }
 0x7e9   :  { %v870_v0 = vmul.f32 %v1643_v63, %v1643_v63 }
 0x7eb   :  { %v874_v1 = vsel %vm37_vm0, %v870_v0, 0.0 }
 0x7ec   :  { %875 = vadd.xlane.f32.xlu1 %v874_v1 }
 0x857   :  { %v873_v12 = vpop.xlane.xlu0 %872 }
 0x858   :  { %v877_v13 = vmul.f32 %v873_v12, %v1638_v57 }
 0x85a   :  { %v879_v14 = vadd.f32 1e-05, %v877_v13 }
 0x85c   :  { %1245 = vrsqrt.f32 %v879_v14  ;;  %vm887_vm5 = vweird.f32 %v879_v14 }
 0x85f   :  { %v876_v22 = vpop.xlane.xlu1 %875 }
 0x860   :  { %v878_v18 = vmul.f32 %v876_v22, %v1638_v57 }
 0x862   :  { %v1246_v25 = vpop.eup %1245  ;;  %v880_v26 = vadd.f32 1e-05, %v878_v18 }
 0x863   :  { %v882_v27 = vmul.f32 %v1246_v25, %v879_v14  ;;  %vm888_vm4 = vweird.f32 %v1246_v25 }
 0x864   :  { %1247 = vrsqrt.f32 %v880_v26  ;;  %vm889_vm6 = vmor %vm887_vm5, %vm888_vm4  ;;  %vm897_vm8 = vweird.f32 %v880_v26 }
 0x865   :  { %v883_v28 = vmul.f32 %v1246_v25, %v882_v27 }
 0x867   :  { %v884_v24 = vmul.f32 0.5, %v883_v28 }
 0x869   :  { %v885_v29 = vsub.f32 1.5, %v884_v24 }
 0x86a   :  { %v1248_v30 = vpop.eup %1247 }
 0x86b   :  { %v886_v23 = vmul.f32 %v1246_v25, %v885_v29  ;;  %v892_v33 = vmul.f32 %v1248_v30, %v880_v26  ;;  %vm898_vm7 = vweird.f32 %v1248_v30 }
 0x86c   :  { %vm899_vm9 = vmor %vm897_vm8, %vm898_vm7 }
 0x86d   :  { %v890_v37 = vsel %vm889_vm6, %v1246_v25, %v886_v23  ;;  %v893_v32 = vmul.f32 %v1248_v30, %v892_v33 }
 0x86e   :  { %v901_v34 = vmul.f32 %v890_v37, %v867_v59 }
 0x86f   :  { %v894_v36 = vmul.f32 0.5, %v893_v32 }
 0x870   :  { %v905_v38 = vmul.f32 %v1204_v31, %v901_v34 }
 0x871   :  { %v895_v39 = vsub.f32 1.5, %v894_v36 }
 0x872   :  { %v909_v40 = vadd.f32 %v1205_v35, %v905_v38 }
 0x873   :  { %v896_v41 = vmul.f32 %v1248_v30, %v895_v39  ;;  %v1210_v39 = vld [vmem:[%s1743_s2 + $0x7] ss:$0 sm:$0xff] }
 0x874   :  { %1179 = vmatmul.msk.f32.vlgmr.msra.gmra.mxu0 %vm37_vm0, %v909_v40  ;;  %1181 = vmatmul.msk.f32.vlgmr.msra.gmra.mxu1 %vm37_vm0, %v909_v40 }
 0x875   :  { %v900_v42 = vsel %vm899_vm9, %v1248_v30, %v896_v41 }
 0x876   :  { %v902_v43 = vmul.f32 %v900_v42, %v1643_v63 }
 0x878   :  { %v906_v44 = vmul.f32 %v1204_v31, %v902_v43 }
 0x87a   :  { %v910_v45 = vadd.f32 %v1205_v35, %v906_v44  ;;  %v1209_v35 = vld [vmem:[%s1743_s2 + $0x6] ss:$0 sm:$0xff]  ;;  %s1281_s2 = smov 128  }
 0x87c   :  { %1180 = vmatmul.msk.f32.gmra.mxu0 %vm37_vm0, %v910_v45  ;;  %1182 = vmatmul.msk.f32.gmra.mxu1 %vm37_vm0, %v910_v45 }
 0x8f1   :  { %v944_v50 = vpop.f32.mrf.mxu0  ;;  %v971_v51 = vpop.f32.mrf.mxu1 }
 0x8f2   :  { %v945_v52 = vadd.f32 %v1206_v48, %v944_v50  ;;  %v972_v53 = vadd.f32 %v1207_v49, %v971_v51 }
 0x8f4   :  { %v950_v54 = vmax.f32 %v945_v52, 0.0  ;;  %v977_v55 = vmax.f32 %v972_v53, 0.0 }
 0x8f6   :  { %1183 = vmatmul.msk.f32.vlgmr.msra.gmra.mxu2 %vm37_vm0, %v977_v55  ;;  %1185 = vmatmul.msk.f32.vlgmr.msra.gmra.mxu3 %vm37_vm0, %v950_v54 }
 0x8f9   :  { %v947_v56 = vpop.f32.mrf.mxu0  ;;  %v974_v6 = vpop.f32.mrf.mxu1 }
 0x8fa   :  { %v948_v58 = vadd.f32 %v1206_v48, %v947_v56  ;;  %v975_v59 = vadd.f32 %v1207_v49, %v974_v6 }
 0x8fc   :  { %v951_v60 = vmax.f32 %v948_v58, 0.0  ;;  %v978_v9 = vmax.f32 %v975_v59, 0.0 }
 0x8fe   :  { %1184 = vmatmul.msk.f32.gmra.mxu2 %vm37_vm0, %v978_v9  ;;  %1186 = vmatmul.msk.f32.gmra.mxu3 %vm37_vm0, %v951_v60 }
 0x979   :  { %v1010_v62 = vpop.f32.mrf.mxu2  ;;  %v1039_v63 = vpop.f32.mrf.mxu3 }
 0x97a   :  { %v1040_v0 = vadd.f32 %v1039_v63, %v1010_v62 }
 0x97c   :  { %v1047_v1 = vadd.f32 %v1208_v61, %v1040_v0 }
 0x97e   :  { %v1049_v2 = vadd.f32 %v1047_v1, %v909_v40 }
 0x980   :  { %v1051_v3 = vsel %vm37_vm0, %v1049_v2, 0.0 }
 0x981   :  { %1052 = vadd.xlane.f32.xlu2 %v1051_v3  ;;  %v1013_v4 = vpop.f32.mrf.mxu2  ;;  %v1042_v5 = vpop.f32.mrf.mxu3 }
 0x982   :  { %v1043_v7 = vadd.f32 %v1042_v5, %v1013_v4 }
 0x984   :  { %v1048_v8 = vadd.f32 %v1208_v61, %v1043_v7 }
 0x986   :  { %v1050_v10 = vadd.f32 %v1048_v8, %v910_v45 }
 0x988   :  { %v1054_v11 = vsel %vm37_vm0, %v1050_v10, 0.0 }
 0x989   :  { %1055 = vadd.xlane.f32.xlu0 %v1054_v11 }
 0x9f4   :  { %v1053_v12 = vpop.xlane.xlu2 %1052 }
 0x9f5   :  { %v1057_v13 = vmul.f32 %v1053_v12, %v1638_v57 }
 0x9f7   :  { %v1059_v14 = vsub.f32 %v1049_v2, %v1057_v13 }
 0x9f9   :  { %v1061_v15 = vmul.f32 %v1059_v14, %v1059_v14 }
 0x9fb   :  { %v1063_v16 = vsel %vm37_vm0, %v1061_v15, 0.0 }
 0x9fc   :  { %v1056_v17 = vpop.xlane.xlu0 %1055  ;;  %1064 = vadd.xlane.f32.xlu1 %v1063_v16 }
 0x9fd   :  { %v1058_v20 = vmul.f32 %v1056_v17, %v1638_v57 }
 0x9ff   :  { %v1060_v19 = vsub.f32 %v1050_v10, %v1058_v20 }
 0xa01   :  { %v1062_v21 = vmul.f32 %v1060_v19, %v1060_v19 }
 0xa03   :  { %v1066_v22 = vsel %vm37_vm0, %v1062_v21, 0.0 }
 0xa04   :  { %1067 = vadd.xlane.f32.xlu2 %v1066_v22 }
 0xa6f   :  { %v1065_v18 = vpop.xlane.xlu1 %1064 }
 0xa70   :  { %v1069_v25 = vmul.f32 %v1065_v18, %v1638_v57 }
 0xa72   :  { %v1071_v26 = vadd.f32 1e-05, %v1069_v25 }
 0xa74   :  { %1249 = vrsqrt.f32 %v1071_v26  ;;  %vm1079_vm11 = vweird.f32 %v1071_v26 }
 0xa77   :  { %v1068_v27 = vpop.xlane.xlu2 %1067 }
 0xa78   :  { %v1070_v28 = vmul.f32 %v1068_v27, %v1638_v57 }
 0xa7a   :  { %v1250_v24 = vpop.eup %1249  ;;  %v1072_v29 = vadd.f32 1e-05, %v1070_v28 }
 0xa7b   :  { %v1074_v30 = vmul.f32 %v1250_v24, %v1071_v26  ;;  %vm1080_vm10 = vweird.f32 %v1250_v24 }
 0xa7c   :  { %1251 = vrsqrt.f32 %v1072_v29  ;;  %vm1081_vm12 = vmor %vm1079_vm11, %vm1080_vm10  ;;  %vm1089_vm14 = vweird.f32 %v1072_v29 }
 0xa7d   :  { %v1075_v23 = vmul.f32 %v1250_v24, %v1074_v30 }
 0xa7f   :  { %v1076_v33 = vmul.f32 0.5, %v1075_v23 }
 0xa81   :  { %v1077_v31 = vsub.f32 1.5, %v1076_v33 }
 0xa82   :  { %v1252_v37 = vpop.eup %1251 }
 0xa83   :  { %v1078_v32 = vmul.f32 %v1250_v24, %v1077_v31  ;;  %v1084_v34 = vmul.f32 %v1252_v37, %v1072_v29  ;;  %vm1090_vm13 = vweird.f32 %v1252_v37 }
 0xa84   :  { %vm1091_vm15 = vmor %vm1089_vm14, %vm1090_vm13 }
 0xa85   :  { %v1082_v36 = vsel %vm1081_vm12, %v1250_v24, %v1078_v32  ;;  %v1085_v38 = vmul.f32 %v1252_v37, %v1084_v34 }
 0xa86   :  { %v1093_v57 = vmul.f32 %v1082_v36, %v1059_v14 }
 0xa87   :  { %v1086_v40 = vmul.f32 0.5, %v1085_v38 }
 0xa88   :  { %v1097_v41 = vmul.f32 %v1209_v35, %v1093_v57 }
 0xa89   :  { %v1087_v42 = vsub.f32 1.5, %v1086_v40 }
 0xa8a   :  { %v1101_v43 = vadd.f32 %v1210_v39, %v1097_v41 }
 0xa8b   :  { %v1088_v44 = vmul.f32 %v1252_v37, %v1087_v42 }
 0xa8c   :  { %1103 = vst.msk [vmem:[#allocation2] sm:$0xff] %vm37_vm0, %v1101_v43 }
 0xa8d   :  { %v1092_v45 = vsel %vm1091_vm15, %v1252_v37, %v1088_v44 }
 0xa8e   :  { %v1094_v46 = vmul.f32 %v1092_v45, %v1060_v19 }
 0xa90   :  { %v1098_v47 = vmul.f32 %v1209_v35, %v1094_v46 }
 0xa92   :  { %v1102_v48 = vadd.f32 %v1210_v39, %v1098_v47 }
 0xa94   :  { %1104 = vst.msk [vmem:[#allocation2 + $0x8] sm:$0xff] %vm37_vm0, %v1102_v48 }
 0xa95   :  { %1117 = dma.vmem_to_hbm [thread:$0]  %s1110_s28, 256, %s1112_s4, [#allocation3], %s1281_s2, %s1281_s2, %s1282_s5  }
 0xa96   :  { %1277 = dma.done.wait [#allocation3], 256  }
 0xa97   :  { %1278 = vsyncadd [#allocation3], 4294967040 }
 0xa98   :  { %1122 = vsyncpa [#allocation3], 1 }

</bundles_post_ra>
